<compile_context>
chip_gen: v7x
topology: tpu7x:2x2x1
jax: 0.10.0
libtpu: 0.0.40
codegen_flags: <defaults>
</compile_context>

<pallas_src>
import functools

import jax
import jax.numpy as jnp
from jax.experimental import pallas as pl
from jax.experimental.pallas import tpu as pltpu

_DEF_BLOCK_ROWS = 256


# ----------------------------- in-kernel helpers -------------------------------

def _cast_fn(use_bf16):
    if use_bf16:
        return lambda a: a.astype(jnp.bfloat16)
    return lambda a: a


def _recip(x):
    """EUP approximate reciprocal + one Newton step (keeps ~f32 accuracy)."""
    r = pl.reciprocal(x, approx=True)
    return r * (2.0 - x * r)


def _layer_norm_relu(y, g, b, real_col, inv_h):
    """LayerNorm over the real `hidden` lanes, then ReLU.

    Requires padded lanes of `y` to be exactly zero; keeps them exactly zero
    (gamma/beta are zero-padded)."""
    mu = jnp.sum(y, axis=-1, keepdims=True) * inv_h
    yc = jnp.where(real_col, y - mu, 0.0)
    var = jnp.sum(yc * yc, axis=-1, keepdims=True) * inv_h
    out = yc * jax.lax.rsqrt(var + 1e-5) * g + b           # padded lanes: 0*..*0 + 0 = 0
    return jnp.maximum(out, 0.0)


def _lane_constants(hp, hidden):
    col = jax.lax.broadcasted_iota(jnp.int32, (1, hp), 1)
    real_col = col < hidden                                  # True on real feature lanes
    eps_vec = jnp.where(real_col, jnp.float32(1e-6), 0.0)    # eps substitution, real lanes only
    onehot = (col == hidden).astype(jnp.float32)             # folded ks_sum / normalizer column
    return real_col, eps_vec, onehot


# ----------------------------- fused (small-N) kernel --------------------------

def sg_fused_kernel(x_ref, fcw_ref, fcb_ref, wqkv_ref, ln_g_ref, ln_b_ref, o_ref,
                    *, num_layers, hidden, n_nodes, use_bf16):
    """Entire forward resident in VMEM (features zero-padded to a 128-lane multiple)."""
    hp = fcw_ref.shape[1]
    rows = x_ref.shape[0]
    real_col, eps_vec, onehot = _lane_constants(hp, hidden)
    inv_h = jnp.float32(1.0 / hidden)
    n = jnp.float32(n_nodes)
    cast = _cast_fn(use_bf16)

    # fc -> LayerNorm -> ReLU
    h = jnp.dot(cast(x_ref[...]), cast(fcw_ref[...]),
                preferred_element_type=jnp.float32) + fcb_ref[...]
    h = _layer_norm_relu(h, ln_g_ref[0], ln_b_ref[0], real_col, inv_h)

    if rows > n_nodes:   # rows padded to sublane granularity -> keep them out of kvs/ks_sum
        row_valid = jax.lax.broadcasted_iota(jnp.int32, (rows, 1), 0) < n_nodes
    else:
        row_valid = None

    for i in range(num_layers):
        # Fused q/k/v projection: one MXU pass with a 3*Hp-wide RHS.
        qkv = jnp.dot(cast(h), cast(wqkv_ref[i]), preferred_element_type=jnp.float32)
        q = qkv[:, :hp]
        k = qkv[:, hp:2 * hp]
        v = qkv[:, 2 * hp:]

        q = jnp.where(q == 0.0, eps_vec, q)          # padded lanes stay exactly 0
        k = jnp.where(k == 0.0, eps_vec, k)
        q = q * jax.lax.rsqrt(jnp.sum(q * q, axis=-1, keepdims=True))
        k = k * jax.lax.rsqrt(jnp.sum(k * k, axis=-1, keepdims=True))
        if row_valid is not None:
            k = jnp.where(row_valid, k, 0.0)

        # Fold the all-ones column (-> ks_sum / normalizer) into v at lane `hidden`.
        v_ext = v + onehot
        # Contraction over dim 0 of k == MXU transposed-LHS path (same HLO as
        # pl.dot(k, v_ext, trans_a=True)); no explicit XLU transpose.
        kvs_ext = jax.lax.dot_general(cast(k), cast(v_ext), (((0,), (0,)), ((), ())),
                                      preferred_element_type=jnp.float32)     # [Hp, Hp]
        full = jnp.dot(cast(q), cast(kvs_ext),
                       preferred_element_type=jnp.float32) + n * v_ext        # [rows, Hp]
        denom = full[:, hidden:hidden + 1]            # static lane slice: q.ks_sum + N
        attn = jnp.where(real_col, full, 0.0) * _recip(denom)

        h = _layer_norm_relu((attn + h) * 0.5, ln_g_ref[i + 1], ln_b_ref[i + 1],
                             real_col, inv_h)

    o_ref[...] = h                                                            # lane-dense store


# ----------------------------- tiled (large-N) kernels -------------------------

def sg_fc_kernel(x_ref, w_ref, b_ref, g_ref, be_ref, o_ref, *, hidden, use_bf16):
    hp = w_ref.shape[1]
    real_col, _, _ = _lane_constants(hp, hidden)
    cast = _cast_fn(use_bf16)
    h = jnp.dot(cast(x_ref[...]), cast(w_ref[...]),
                preferred_element_type=jnp.float32) + b_ref[...]
    o_ref[...] = _layer_norm_relu(h, g_ref[...], be_ref[...], real_col,
                                  jnp.float32(1.0 / hidden))


def sg_kvs_kernel(h_ref, wkv_ref, kvs_ref, *, hidden, n_nodes, block_rows, use_bf16):
    """Pass 1: accumulate kvs_ext (with folded ks_sum column) over row tiles."""
    r = pl.program_id(0)

    @pl.when(r == 0)
    def _():
        kvs_ref[...] = jnp.zeros_like(kvs_ref)

    hp = wkv_ref.shape[0]
    real_col, eps_vec, onehot = _lane_constants(hp, hidden)
    cast = _cast_fn(use_bf16)

    kv = jnp.dot(cast(h_ref[...]), cast(wkv_ref[...]), preferred_element_type=jnp.float32)
    k = kv[:, :hp]
    v = kv[:, hp:]
    k = jnp.where(k == 0.0, eps_vec, k)
    k = k * jax.lax.rsqrt(jnp.sum(k * k, axis=-1, keepdims=True))
    row_id = r * block_rows + jax.lax.broadcasted_iota(jnp.int32, (block_rows, 1), 0)
    k = jnp.where(row_id < n_nodes, k, 0.0)           # padded rows contribute nothing
    v_ext = v + onehot
    kvs_ref[...] += jax.lax.dot_general(cast(k), cast(v_ext), (((0,), (0,)), ((), ())),
                                        preferred_element_type=jnp.float32)


def sg_attn_kernel(h_ref, wqv_ref, kvs_ref, g_ref, be_ref, o_ref, *, hidden, n_nodes, use_bf16):
    """Pass 2: per row tile, q projection -> attention -> residual avg -> LN -> ReLU."""
    hp = kvs_ref.shape[0]
    real_col, eps_vec, onehot = _lane_constants(hp, hidden)
    n = jnp.float32(n_nodes)
    cast = _cast_fn(use_bf16)

    h = h_ref[...]
    qv = jnp.dot(cast(h), cast(wqv_ref[...]), preferred_element_type=jnp.float32)
    q = qv[:, :hp]
    v = qv[:, hp:]
    q = jnp.where(q == 0.0, eps_vec, q)
    q = q * jax.lax.rsqrt(jnp.sum(q * q, axis=-1, keepdims=True))
    v_ext = v + onehot

    full = jnp.dot(cast(q), cast(kvs_ref[...]),
                   preferred_element_type=jnp.float32) + n * v_ext
    denom = full[:, hidden:hidden + 1]
    attn = jnp.where(real_col, full, 0.0) * _recip(denom)
    o_ref[...] = _layer_norm_relu((attn + h) * 0.5, g_ref[...], be_ref[...], real_col,
                                  jnp.float32(1.0 / hidden))


# ----------------------------- host-side wrappers -------------------------------

def _round_up(x, m):
    return ((x + m - 1) // m) * m


def _vmem_budget_bytes():
    try:
        cap = int(pltpu.get_tpu_info().vmem_capacity_bytes)   # per-generation (v5e/v6e: 128MiB, v7x: 64MiB)
    except Exception:
        cap = 64 << 20                                        # conservative fallback
    return (cap * 3) // 4                                     # leave headroom


def prepare_params(params, num_layers):
    """One-time padding / concatenation of the weights (kept out of the per-call jit)."""
    in_ch, hidden = params["fc_w"].shape
    inp = _round_up(in_ch, 128)
    hp = _round_up(hidden + 1, 128)        # +1 guarantees a spare lane for the folded normalizer

    def pad_h(w):
        return jnp.pad(w, ((0, hp - hidden), (0, hp - hidden)))

    wq = [pad_h(params["wq"][i]) for i in range(num_layers)]
    wk = [pad_h(params["wk"][i]) for i in range(num_layers)]
    wv = [pad_h(params["wv"][i]) for i in range(num_layers)]
    return {
        "fcw": jnp.pad(params["fc_w"], ((0, inp - in_ch), (0, hp - hidden))),
        "fcb": jnp.pad(params["fc_b"], ((0, 0), (0, hp - hidden))),
        "wqkv": jnp.stack([jnp.concatenate([wq[i], wk[i], wv[i]], axis=1)
                           for i in range(num_layers)]),                      # [L, Hp, 3Hp]
        "wkv": jnp.stack([jnp.concatenate([wk[i], wv[i]], axis=1)
                          for i in range(num_layers)]),                       # [L, Hp, 2Hp]
        "wqv": jnp.stack([jnp.concatenate([wq[i], wv[i]], axis=1)
                          for i in range(num_layers)]),                       # [L, Hp, 2Hp]
        "ln_g": jnp.stack([jnp.pad(g, ((0, 0), (0, hp - hidden))) for g in params["ln_g"]]),
        "ln_b": jnp.stack([jnp.pad(b, ((0, 0), (0, hp - hidden))) for b in params["ln_b"]]),
    }


@functools.partial(jax.jit,
                   static_argnames=("num_layers", "hidden", "use_bf16", "vmem_limit"))
def _forward_fused(x, fcw_p, fcb_p, wqkv_p, ln_g_p, ln_b_p, *,
                   num_layers, hidden, use_bf16, vmem_limit):
    n, in_ch = x.shape
    inp, hp = fcw_p.shape
    rows = _round_up(n, 8)                                    # f32 sublane granularity
    x_p = jnp.pad(x, ((0, rows - n), (0, inp - in_ch)))

    flops = 2 * rows * inp * hp + num_layers * (2 * rows * hp * 3 * hp + 4 * rows * hp * hp)
    bytes_accessed = 4 * (rows * inp + inp * hp + num_layers * hp * 3 * hp
                          + 2 * (num_layers + 1) * hp + rows * hp)

    kernel = functools.partial(sg_fused_kernel, num_layers=num_layers, hidden=hidden,
                               n_nodes=n, use_bf16=use_bf16)
    out = pl.pallas_call(
        kernel,
        out_shape=jax.ShapeDtypeStruct((rows, hp), jnp.float32),
        in_specs=[pl.BlockSpec(memory_space=pltpu.MemorySpace.VMEM)] * 6,
        out_specs=pl.BlockSpec(memory_space=pltpu.MemorySpace.VMEM),
        compiler_params=pltpu.CompilerParams(vmem_limit_bytes=vmem_limit),
        cost_estimate=pl.CostEstimate(flops=flops,
                                      transcendentals=rows * (3 * num_layers + 1),
                                      bytes_accessed=bytes_accessed),
    )(x_p, fcw_p, fcb_p, wqkv_p, ln_g_p, ln_b_p)
    return out[:n, :hidden]


@functools.partial(jax.jit,
                   static_argnames=("num_layers", "hidden", "use_bf16", "block_rows", "vmem_limit"))
def _forward_tiled(x, fcw_p, fcb_p, wkv_p, wqv_p, ln_g_p, ln_b_p, *,
                   num_layers, hidden, use_bf16, block_rows, vmem_limit):
    """Row-tiled path: fc pass + per-layer (kvs reduction pass, attention pass)."""
    n, in_ch = x.shape
    inp, hp = fcw_p.shape
    tm = block_rows
    np_ = _round_up(n, tm)
    x_p = jnp.pad(x, ((0, np_ - n), (0, inp - in_ch)))
    ngrid = np_ // tm

    par = pltpu.CompilerParams(dimension_semantics=("parallel",), vmem_limit_bytes=vmem_limit)
    arb = pltpu.CompilerParams(dimension_semantics=("arbitrary",), vmem_limit_bytes=vmem_limit)
    vec_spec = pl.BlockSpec((1, hp), lambda i: (0, 0))

    h = pl.pallas_call(
        functools.partial(sg_fc_kernel, hidden=hidden, use_bf16=use_bf16),
        out_shape=jax.ShapeDtypeStruct((np_, hp), jnp.float32),
        grid=(ngrid,),
        in_specs=[pl.BlockSpec((tm, inp), lambda i: (i, 0)),
                  pl.BlockSpec((inp, hp), lambda i: (0, 0)),
                  vec_spec, vec_spec, vec_spec],
        out_specs=pl.BlockSpec((tm, hp), lambda i: (i, 0)),
        compiler_params=par,
    )(x_p, fcw_p, fcb_p, ln_g_p[0], ln_b_p[0])

    for i in range(num_layers):
        # Pass 1: global kvs_ext / ks_sum reduction over row tiles (accumulator output).
        kvs = pl.pallas_call(
            functools.partial(sg_kvs_kernel, hidden=hidden, n_nodes=n,
                              block_rows=tm, use_bf16=use_bf16),
            out_shape=jax.ShapeDtypeStruct((hp, hp), jnp.float32),
            grid=(ngrid,),
            in_specs=[pl.BlockSpec((tm, hp), lambda r: (r, 0)),
                      pl.BlockSpec((hp, 2 * hp), lambda r: (0, 0))],
            out_specs=pl.BlockSpec((hp, hp), lambda r: (0, 0)),
            compiler_params=arb,
        )(h, wkv_p[i])

        # Pass 2: stream q row tiles, attention + residual + LN + ReLU ("parallel" -> megacore).
        h = pl.pallas_call(
            functools.partial(sg_attn_kernel, hidden=hidden, n_nodes=n, use_bf16=use_bf16),
            out_shape=jax.ShapeDtypeStruct((np_, hp), jnp.float32),
            grid=(ngrid,),
            in_specs=[pl.BlockSpec((tm, hp), lambda r: (r, 0)),
                      pl.BlockSpec((hp, 2 * hp), lambda r: (0, 0)),
                      pl.BlockSpec((hp, hp), lambda r: (0, 0)),
                      vec_spec, vec_spec],
            out_specs=pl.BlockSpec((tm, hp), lambda r: (r, 0)),
            compiler_params=par,
        )(h, wqv_p[i], kvs, ln_g_p[i + 1], ln_b_p[i + 1])

    return h[:n, :hidden]


def sgmodule_forward(x, prep, *, num_layers, hidden, use_bf16=False, path="auto",
                     block_rows=_DEF_BLOCK_ROWS):
    """Dispatcher: fused single-launch kernel when activations fit VMEM, tiled path otherwise."""
    n = x.shape[0]
    inp, hp = prep["fcw"].shape
    budget = _vmem_budget_bytes()

    if path == "auto":
        rows8 = _round_up(n, 8)
        est = 4 * (rows8 * inp + 8 * rows8 * hp + inp * hp
                   + num_layers * 3 * hp * hp + 2 * (num_layers + 1) * hp + hp * hp)
        path = "fused" if est <= budget else "tiled"

    if path == "fused":
        return _forward_fused(x, prep["fcw"], prep["fcb"], prep["wqkv"],
                              prep["ln_g"], prep["ln_b"],
                              num_layers=num_layers, hidden=hidden, use_bf16=use_bf16,
                              vmem_limit=min(budget, 100 << 20))
    return _forward_tiled(x, prep["fcw"], prep["fcb"], prep["wkv"], prep["wqv"],
                          prep["ln_g"], prep["ln_b"],
                          num_layers=num_layers, hidden=hidden, use_bf16=use_bf16,
                          block_rows=block_rows, vmem_limit=min(budget, 64 << 20))


# ----------------------------- reference (pure JAX, f32-highest) ----------------

def sgmodule_reference(x, params, num_layers=2):
    hi = jax.lax.Precision.HIGHEST

    def ln(y, g, b):
        mu = y.mean(-1, keepdims=True)
        var = ((y - mu) ** 2).mean(-1, keepdims=True)
        return (y - mu) / jnp.sqrt(var + 1e-5) * g + b

    h = jnp.maximum(ln(jnp.dot(x, params["fc_w"], precision=hi) + params["fc_b"],
                       params["ln_g"][0], params["ln_b"][0]), 0.0)
    n = x.shape[0]
    for i in range(num_layers):
        q = jnp.dot(h, params["wq"][i], precision=hi)
        k = jnp.dot(h, params["wk"][i], precision=hi)
        v = jnp.dot(h, params["wv"][i], precision=hi)
        q = jnp.where(q == 0.0, 1e-6, q)
        k = jnp.where(k == 0.0, 1e-6, k)
        q = q / jnp.linalg.norm(q, axis=-1, keepdims=True)
        k = k / jnp.linalg.norm(k, axis=-1, keepdims=True)
        kvs = jnp.einsum("lm,ld->md", k, v, precision=hi)
        num = jnp.einsum("nm,md->nd", q, kvs, precision=hi) + n * v
        denom = jnp.einsum("nm,m->n", q, k.sum(0), precision=hi)[:, None] + n
        out = num / denom
        h = jnp.maximum(ln((out + h) * 0.5, params["ln_g"][i + 1], params["ln_b"][i + 1]), 0.0)
    return h


# ----------------------------- params & main ------------------------------------

def init_params(key, in_channels, hidden, num_layers):
    def kaiming_uniform(k, fan_in, shape):
        bound = (6.0 / fan_in) ** 0.5
        return jax.random.uniform(k, shape, jnp.float32, -bound, bound)

    keys = jax.random.split(key, 1 + 3 * num_layers)
    params = {
        "fc_w": kaiming_uniform(keys[0], in_channels, (in_channels, hidden)),
        "fc_b": jnp.zeros((1, hidden), jnp.float32),
        "ln_g": [jnp.ones((1, hidden), jnp.float32) for _ in range(num_layers + 1)],
        "ln_b": [jnp.zeros((1, hidden), jnp.float32) for _ in range(num_layers + 1)],
        "wq": [], "wk": [], "wv": [],
    }
    for i in range(num_layers):
        params["wq"].append(kaiming_uniform(keys[1 + 3 * i + 0], hidden, (hidden, hidden)))
        params["wk"].append(kaiming_uniform(keys[1 + 3 * i + 1], hidden, (hidden, hidden)))
        params["wv"].append(kaiming_uniform(keys[1 + 3 * i + 2], hidden, (hidden, hidden)))
    return params


if __name__ == "__main__":
    N, IN_CH, HIDDEN, NUM_LAYERS = 16, 8, 32, 2

    key = jax.random.PRNGKey(0)
    kx, kp, kx2 = jax.random.split(key, 3)
    x = jax.random.normal(kx, (N, IN_CH), jnp.float32)
    params = init_params(kp, IN_CH, HIDDEN, NUM_LAYERS)
    prep = prepare_params(params, NUM_LAYERS)          # pad/concat weights once, outside the jit

    # 1) fused single-launch path (auto-selected for small N), full-f32 MXU.
    out = jax.block_until_ready(
        sgmodule_forward(x, prep, num_layers=NUM_LAYERS, hidden=HIDDEN))
    ref = sgmodule_reference(x, params, num_layers=NUM_LAYERS)
    assert out.shape == (N, HIDDEN)
    assert jnp.allclose(out, ref, atol=1e-4, rtol=1e-4), "fused f32 mismatch vs reference"

    # 2) fused path with bf16 MXU operands (v6e/v7x fast path; f32 accumulation).
    out_bf16 = jax.block_until_ready(
        sgmodule_forward(x, prep, num_layers=NUM_LAYERS, hidden=HIDDEN, use_bf16=True))
    assert jnp.allclose(out_bf16, ref, atol=5e-2, rtol=5e-2), "fused bf16 mismatch vs reference"

    # 3) row-tiled two-pass path (forced) at a larger, non-tile-multiple N.
    N2 = 1000
    x2 = jax.random.normal(kx2, (N2, IN_CH), jnp.float32)
    out_t = jax.block_until_ready(
        sgmodule_forward(x2, prep, num_layers=NUM_LAYERS, hidden=HIDDEN,
                         path="tiled", block_rows=256))
    ref2 = sgmodule_reference(x2, params, num_layers=NUM_LAYERS)
    assert out_t.shape == (N2, HIDDEN)
    assert jnp.allclose(out_t, ref2, atol=1e-3, rtol=1e-3), "tiled f32 mismatch vs reference"

    print("KERNEL_OK")
</pallas_src>

<mosaic_0001>
module attributes {stable_mosaic.version = 11 : i64} {
  func.func @sg_fused_kernel(%arg0: memref<16x128xf32, #tpu.memory_space<vmem>>, %arg1: memref<128x128xf32, #tpu.memory_space<vmem>>, %arg2: memref<1x128xf32, #tpu.memory_space<vmem>>, %arg3: memref<2x128x384xf32, #tpu.memory_space<vmem>>, %arg4: memref<3x1x128xf32, #tpu.memory_space<vmem>>, %arg5: memref<3x1x128xf32, #tpu.memory_space<vmem>>, %arg6: memref<16x128xf32, #tpu.memory_space<vmem>>) attributes {dimension_semantics = [], scalar_prefetch = 0 : i64, scratch_operands = 0 : i64, tpu.core_type = #tpu.core_type<tc>} {
    %0 = tpu.iota {dimensions = array<i32: 1>} : vector<1x128xi32>
    %c32_i32 = arith.constant 32 : i32
    %1 = vector.broadcast %c32_i32 : i32 to vector<1x128xi32>
    %2 = arith.cmpi slt, %0, %1 : vector<1x128xi32>
    %cst = arith.constant 9.99999997E-7 : f32
    %cst_0 = arith.constant 0.000000e+00 : f32
    %3 = vector.broadcast %cst : f32 to vector<1x128xf32>
    %4 = vector.broadcast %cst_0 : f32 to vector<1x128xf32>
    %5 = arith.select %2, %3, %4 : vector<1x128xi1>, vector<1x128xf32>
    %c32_i32_1 = arith.constant 32 : i32
    %6 = vector.broadcast %c32_i32_1 : i32 to vector<1x128xi32>
    %7 = arith.cmpi eq, %0, %6 : vector<1x128xi32>
    %8 = arith.extui %7 : vector<1x128xi1> to vector<1x128xi32>
    %9 = arith.sitofp %8 : vector<1x128xi32> to vector<1x128xf32>
    %c0 = arith.constant 0 : index
    %c0_2 = arith.constant 0 : index
    %10 = vector.load %arg0[%c0, %c0_2] : memref<16x128xf32, #tpu.memory_space<vmem>>, vector<16x128xf32>
    %c0_3 = arith.constant 0 : index
    %c0_4 = arith.constant 0 : index
    %11 = vector.load %arg1[%c0_3, %c0_4] : memref<128x128xf32, #tpu.memory_space<vmem>>, vector<128x128xf32>
    %cst_5 = arith.constant dense<0.000000e+00> : vector<16x128xf32>
    %12 = tpu.matmul %10, %11, %cst_5 {dimension_numbers = #tpu.dot_dimension_numbers<[1], [0], [0], [1], [0, 0, 1, 1], [], []>} : vector<16x128xf32>, vector<128x128xf32>, vector<16x128xf32> -> vector<16x128xf32>
    %c0_6 = arith.constant 0 : index
    %c0_7 = arith.constant 0 : index
    %13 = vector.load %arg2[%c0_6, %c0_7] : memref<1x128xf32, #tpu.memory_space<vmem>>, vector<1x128xf32>
    %14 = vector.broadcast %13 : vector<1x128xf32> to vector<16x128xf32>
    %15 = arith.addf %12, %14 : vector<16x128xf32>
    %c0_8 = arith.constant 0 : index
    %c0_9 = arith.constant 0 : index
    %c0_10 = arith.constant 0 : index
    %16 = vector.load %arg4[%c0_8, %c0_9, %c0_10] : memref<3x1x128xf32, #tpu.memory_space<vmem>>, vector<1x1x128xf32>
    %17 = vector.shape_cast %16 : vector<1x1x128xf32> to vector<1x128xf32>
    %c0_11 = arith.constant 0 : index
    %c0_12 = arith.constant 0 : index
    %c0_13 = arith.constant 0 : index
    %18 = vector.load %arg5[%c0_11, %c0_12, %c0_13] : memref<3x1x128xf32, #tpu.memory_space<vmem>>, vector<1x1x128xf32>
    %19 = vector.shape_cast %18 : vector<1x1x128xf32> to vector<1x128xf32>
    %cst_14 = arith.constant dense<0.000000e+00> : vector<16xf32>
    %20 = vector.multi_reduction <add>, %15, %cst_14 [1] : vector<16x128xf32> to vector<16xf32>
    %21 = vector.shape_cast %20 : vector<16xf32> to vector<16x1xf32>
    %cst_15 = arith.constant 3.125000e-02 : f32
    %22 = vector.broadcast %cst_15 : f32 to vector<16x1xf32>
    %23 = arith.mulf %21, %22 : vector<16x1xf32>
    %24 = vector.broadcast %23 : vector<16x1xf32> to vector<16x128xf32>
    %25 = arith.subf %15, %24 : vector<16x128xf32>
    %cst_16 = arith.constant 0.000000e+00 : f32
    %26 = vector.shape_cast %2 : vector<1x128xi1> to vector<1x128xi1>
    %27 = vector.broadcast %26 : vector<1x128xi1> to vector<16x128xi1>
    %28 = vector.broadcast %cst_16 : f32 to vector<16x128xf32>
    %29 = arith.select %27, %25, %28 : vector<16x128xi1>, vector<16x128xf32>
    %30 = arith.mulf %29, %29 : vector<16x128xf32>
    %cst_17 = arith.constant dense<0.000000e+00> : vector<16xf32>
    %31 = vector.multi_reduction <add>, %30, %cst_17 [1] : vector<16x128xf32> to vector<16xf32>
    %32 = vector.shape_cast %31 : vector<16xf32> to vector<16x1xf32>
    %cst_18 = arith.constant 3.125000e-02 : f32
    %33 = vector.broadcast %cst_18 : f32 to vector<16x1xf32>
    %34 = arith.mulf %32, %33 : vector<16x1xf32>
    %cst_19 = arith.constant 9.99999974E-6 : f32
    %35 = vector.broadcast %cst_19 : f32 to vector<16x1xf32>
    %36 = arith.addf %34, %35 : vector<16x1xf32>
    %37 = math.rsqrt %36 : vector<16x1xf32>
    %38 = vector.broadcast %37 : vector<16x1xf32> to vector<16x128xf32>
    %39 = arith.mulf %29, %38 : vector<16x128xf32>
    %40 = vector.broadcast %17 : vector<1x128xf32> to vector<16x128xf32>
    %41 = arith.mulf %39, %40 : vector<16x128xf32>
    %42 = vector.broadcast %19 : vector<1x128xf32> to vector<16x128xf32>
    %43 = arith.addf %41, %42 : vector<16x128xf32>
    %cst_20 = arith.constant 0.000000e+00 : f32
    %44 = vector.broadcast %cst_20 : f32 to vector<16x128xf32>
    %45 = arith.maximumf %43, %44 : vector<16x128xf32>
    %c0_21 = arith.constant 0 : index
    %c0_22 = arith.constant 0 : index
    %c0_23 = arith.constant 0 : index
    %46 = vector.load %arg3[%c0_21, %c0_22, %c0_23] : memref<2x128x384xf32, #tpu.memory_space<vmem>>, vector<1x128x384xf32>
    %47 = vector.shape_cast %46 : vector<1x128x384xf32> to vector<128x384xf32>
    %cst_24 = arith.constant dense<0.000000e+00> : vector<16x384xf32>
    %48 = tpu.matmul %45, %47, %cst_24 {dimension_numbers = #tpu.dot_dimension_numbers<[1], [0], [0], [1], [0, 0, 1, 1], [], []>} : vector<16x128xf32>, vector<128x384xf32>, vector<16x384xf32> -> vector<16x384xf32>
    %49 = vector.extract_strided_slice %48 {offsets = [0, 0], sizes = [16, 128], strides = [1, 1]} : vector<16x384xf32> to vector<16x128xf32>
    %50 = vector.extract_strided_slice %48 {offsets = [0, 128], sizes = [16, 128], strides = [1, 1]} : vector<16x384xf32> to vector<16x128xf32>
    %51 = vector.extract_strided_slice %48 {offsets = [0, 256], sizes = [16, 128], strides = [1, 1]} : vector<16x384xf32> to vector<16x128xf32>
    %cst_25 = arith.constant 0.000000e+00 : f32
    %52 = vector.broadcast %cst_25 : f32 to vector<16x128xf32>
    %53 = arith.cmpf oeq, %49, %52 : vector<16x128xf32>
    %54 = vector.shape_cast %5 : vector<1x128xf32> to vector<1x128xf32>
    %55 = vector.broadcast %54 : vector<1x128xf32> to vector<16x128xf32>
    %56 = arith.select %53, %55, %49 : vector<16x128xi1>, vector<16x128xf32>
    %cst_26 = arith.constant 0.000000e+00 : f32
    %57 = vector.broadcast %cst_26 : f32 to vector<16x128xf32>
    %58 = arith.cmpf oeq, %50, %57 : vector<16x128xf32>
    %59 = vector.shape_cast %5 : vector<1x128xf32> to vector<1x128xf32>
    %60 = vector.broadcast %59 : vector<1x128xf32> to vector<16x128xf32>
    %61 = arith.select %58, %60, %50 : vector<16x128xi1>, vector<16x128xf32>
    %62 = arith.mulf %56, %56 : vector<16x128xf32>
    %cst_27 = arith.constant dense<0.000000e+00> : vector<16xf32>
    %63 = vector.multi_reduction <add>, %62, %cst_27 [1] : vector<16x128xf32> to vector<16xf32>
    %64 = vector.shape_cast %63 : vector<16xf32> to vector<16x1xf32>
    %65 = math.rsqrt %64 : vector<16x1xf32>
    %66 = vector.broadcast %65 : vector<16x1xf32> to vector<16x128xf32>
    %67 = arith.mulf %56, %66 : vector<16x128xf32>
    %68 = arith.mulf %61, %61 : vector<16x128xf32>
    %cst_28 = arith.constant dense<0.000000e+00> : vector<16xf32>
    %69 = vector.multi_reduction <add>, %68, %cst_28 [1] : vector<16x128xf32> to vector<16xf32>
    %70 = vector.shape_cast %69 : vector<16xf32> to vector<16x1xf32>
    %71 = math.rsqrt %70 : vector<16x1xf32>
    %72 = vector.broadcast %71 : vector<16x1xf32> to vector<16x128xf32>
    %73 = arith.mulf %61, %72 : vector<16x128xf32>
    %74 = vector.broadcast %9 : vector<1x128xf32> to vector<16x128xf32>
    %75 = arith.addf %51, %74 : vector<16x128xf32>
    %cst_29 = arith.constant dense<0.000000e+00> : vector<128x128xf32>
    %76 = tpu.matmul %73, %75, %cst_29 {dimension_numbers = #tpu.dot_dimension_numbers<[0], [0], [1], [1], [0, 1, 1, 1], [], []>} : vector<16x128xf32>, vector<16x128xf32>, vector<128x128xf32> -> vector<128x128xf32>
    %cst_30 = arith.constant dense<0.000000e+00> : vector<16x128xf32>
    %77 = tpu.matmul %67, %76, %cst_30 {dimension_numbers = #tpu.dot_dimension_numbers<[1], [0], [0], [1], [0, 0, 1, 1], [], []>} : vector<16x128xf32>, vector<128x128xf32>, vector<16x128xf32> -> vector<16x128xf32>
    %cst_31 = arith.constant 1.600000e+01 : f32
    %78 = vector.broadcast %cst_31 : f32 to vector<16x128xf32>
    %79 = arith.mulf %78, %75 : vector<16x128xf32>
    %80 = arith.addf %77, %79 : vector<16x128xf32>
    %81 = vector.extract_strided_slice %80 {offsets = [0, 32], sizes = [16, 1], strides = [1, 1]} : vector<16x128xf32> to vector<16x1xf32>
    %cst_32 = arith.constant 0.000000e+00 : f32
    %82 = vector.shape_cast %2 : vector<1x128xi1> to vector<1x128xi1>
    %83 = vector.broadcast %82 : vector<1x128xi1> to vector<16x128xi1>
    %84 = vector.broadcast %cst_32 : f32 to vector<16x128xf32>
    %85 = arith.select %83, %80, %84 : vector<16x128xi1>, vector<16x128xf32>
    %86 = tpu.reciprocal %81 {approx = true} : vector<16x1xf32> -> vector<16x1xf32>
    %87 = arith.mulf %81, %86 : vector<16x1xf32>
    %cst_33 = arith.constant 2.000000e+00 : f32
    %88 = vector.broadcast %cst_33 : f32 to vector<16x1xf32>
    %89 = arith.subf %88, %87 : vector<16x1xf32>
    %90 = arith.mulf %86, %89 : vector<16x1xf32>
    %91 = vector.broadcast %90 : vector<16x1xf32> to vector<16x128xf32>
    %92 = arith.mulf %85, %91 : vector<16x128xf32>
    %93 = arith.addf %92, %45 : vector<16x128xf32>
    %cst_34 = arith.constant 5.000000e-01 : f32
    %94 = vector.broadcast %cst_34 : f32 to vector<16x128xf32>
    %95 = arith.mulf %93, %94 : vector<16x128xf32>
    %c1 = arith.constant 1 : index
    %c0_35 = arith.constant 0 : index
    %c0_36 = arith.constant 0 : index
    %96 = vector.load %arg4[%c1, %c0_35, %c0_36] : memref<3x1x128xf32, #tpu.memory_space<vmem>>, vector<1x1x128xf32>
    %97 = vector.shape_cast %96 : vector<1x1x128xf32> to vector<1x128xf32>
    %c1_37 = arith.constant 1 : index
    %c0_38 = arith.constant 0 : index
    %c0_39 = arith.constant 0 : index
    %98 = vector.load %arg5[%c1_37, %c0_38, %c0_39] : memref<3x1x128xf32, #tpu.memory_space<vmem>>, vector<1x1x128xf32>
    %99 = vector.shape_cast %98 : vector<1x1x128xf32> to vector<1x128xf32>
    %cst_40 = arith.constant dense<0.000000e+00> : vector<16xf32>
    %100 = vector.multi_reduction <add>, %95, %cst_40 [1] : vector<16x128xf32> to vector<16xf32>
    %101 = vector.shape_cast %100 : vector<16xf32> to vector<16x1xf32>
    %cst_41 = arith.constant 3.125000e-02 : f32
    %102 = vector.broadcast %cst_41 : f32 to vector<16x1xf32>
    %103 = arith.mulf %101, %102 : vector<16x1xf32>
    %104 = vector.broadcast %103 : vector<16x1xf32> to vector<16x128xf32>
    %105 = arith.subf %95, %104 : vector<16x128xf32>
    %cst_42 = arith.constant 0.000000e+00 : f32
    %106 = vector.shape_cast %2 : vector<1x128xi1> to vector<1x128xi1>
    %107 = vector.broadcast %106 : vector<1x128xi1> to vector<16x128xi1>
    %108 = vector.broadcast %cst_42 : f32 to vector<16x128xf32>
    %109 = arith.select %107, %105, %108 : vector<16x128xi1>, vector<16x128xf32>
    %110 = arith.mulf %109, %109 : vector<16x128xf32>
    %cst_43 = arith.constant dense<0.000000e+00> : vector<16xf32>
    %111 = vector.multi_reduction <add>, %110, %cst_43 [1] : vector<16x128xf32> to vector<16xf32>
    %112 = vector.shape_cast %111 : vector<16xf32> to vector<16x1xf32>
    %cst_44 = arith.constant 3.125000e-02 : f32
    %113 = vector.broadcast %cst_44 : f32 to vector<16x1xf32>
    %114 = arith.mulf %112, %113 : vector<16x1xf32>
    %cst_45 = arith.constant 9.99999974E-6 : f32
    %115 = vector.broadcast %cst_45 : f32 to vector<16x1xf32>
    %116 = arith.addf %114, %115 : vector<16x1xf32>
    %117 = math.rsqrt %116 : vector<16x1xf32>
    %118 = vector.broadcast %117 : vector<16x1xf32> to vector<16x128xf32>
    %119 = arith.mulf %109, %118 : vector<16x128xf32>
    %120 = vector.broadcast %97 : vector<1x128xf32> to vector<16x128xf32>
    %121 = arith.mulf %119, %120 : vector<16x128xf32>
    %122 = vector.broadcast %99 : vector<1x128xf32> to vector<16x128xf32>
    %123 = arith.addf %121, %122 : vector<16x128xf32>
    %cst_46 = arith.constant 0.000000e+00 : f32
    %124 = vector.broadcast %cst_46 : f32 to vector<16x128xf32>
    %125 = arith.maximumf %123, %124 : vector<16x128xf32>
    %c1_47 = arith.constant 1 : index
    %c0_48 = arith.constant 0 : index
    %c0_49 = arith.constant 0 : index
    %126 = vector.load %arg3[%c1_47, %c0_48, %c0_49] : memref<2x128x384xf32, #tpu.memory_space<vmem>>, vector<1x128x384xf32>
    %127 = vector.shape_cast %126 : vector<1x128x384xf32> to vector<128x384xf32>
    %cst_50 = arith.constant dense<0.000000e+00> : vector<16x384xf32>
    %128 = tpu.matmul %125, %127, %cst_50 {dimension_numbers = #tpu.dot_dimension_numbers<[1], [0], [0], [1], [0, 0, 1, 1], [], []>} : vector<16x128xf32>, vector<128x384xf32>, vector<16x384xf32> -> vector<16x384xf32>
    %129 = vector.extract_strided_slice %128 {offsets = [0, 0], sizes = [16, 128], strides = [1, 1]} : vector<16x384xf32> to vector<16x128xf32>
    %130 = vector.extract_strided_slice %128 {offsets = [0, 128], sizes = [16, 128], strides = [1, 1]} : vector<16x384xf32> to vector<16x128xf32>
    %131 = vector.extract_strided_slice %128 {offsets = [0, 256], sizes = [16, 128], strides = [1, 1]} : vector<16x384xf32> to vector<16x128xf32>
    %cst_51 = arith.constant 0.000000e+00 : f32
    %132 = vector.broadcast %cst_51 : f32 to vector<16x128xf32>
    %133 = arith.cmpf oeq, %129, %132 : vector<16x128xf32>
    %134 = vector.shape_cast %5 : vector<1x128xf32> to vector<1x128xf32>
    %135 = vector.broadcast %134 : vector<1x128xf32> to vector<16x128xf32>
    %136 = arith.select %133, %135, %129 : vector<16x128xi1>, vector<16x128xf32>
    %cst_52 = arith.constant 0.000000e+00 : f32
    %137 = vector.broadcast %cst_52 : f32 to vector<16x128xf32>
    %138 = arith.cmpf oeq, %130, %137 : vector<16x128xf32>
    %139 = vector.shape_cast %5 : vector<1x128xf32> to vector<1x128xf32>
    %140 = vector.broadcast %139 : vector<1x128xf32> to vector<16x128xf32>
    %141 = arith.select %138, %140, %130 : vector<16x128xi1>, vector<16x128xf32>
    %142 = arith.mulf %136, %136 : vector<16x128xf32>
    %cst_53 = arith.constant dense<0.000000e+00> : vector<16xf32>
    %143 = vector.multi_reduction <add>, %142, %cst_53 [1] : vector<16x128xf32> to vector<16xf32>
    %144 = vector.shape_cast %143 : vector<16xf32> to vector<16x1xf32>
    %145 = math.rsqrt %144 : vector<16x1xf32>
    %146 = vector.broadcast %145 : vector<16x1xf32> to vector<16x128xf32>
    %147 = arith.mulf %136, %146 : vector<16x128xf32>
    %148 = arith.mulf %141, %141 : vector<16x128xf32>
    %cst_54 = arith.constant dense<0.000000e+00> : vector<16xf32>
    %149 = vector.multi_reduction <add>, %148, %cst_54 [1] : vector<16x128xf32> to vector<16xf32>
    %150 = vector.shape_cast %149 : vector<16xf32> to vector<16x1xf32>
    %151 = math.rsqrt %150 : vector<16x1xf32>
    %152 = vector.broadcast %151 : vector<16x1xf32> to vector<16x128xf32>
    %153 = arith.mulf %141, %152 : vector<16x128xf32>
    %154 = vector.broadcast %9 : vector<1x128xf32> to vector<16x128xf32>
    %155 = arith.addf %131, %154 : vector<16x128xf32>
    %cst_55 = arith.constant dense<0.000000e+00> : vector<128x128xf32>
    %156 = tpu.matmul %153, %155, %cst_55 {dimension_numbers = #tpu.dot_dimension_numbers<[0], [0], [1], [1], [0, 1, 1, 1], [], []>} : vector<16x128xf32>, vector<16x128xf32>, vector<128x128xf32> -> vector<128x128xf32>
    %cst_56 = arith.constant dense<0.000000e+00> : vector<16x128xf32>
    %157 = tpu.matmul %147, %156, %cst_56 {dimension_numbers = #tpu.dot_dimension_numbers<[1], [0], [0], [1], [0, 0, 1, 1], [], []>} : vector<16x128xf32>, vector<128x128xf32>, vector<16x128xf32> -> vector<16x128xf32>
    %cst_57 = arith.constant 1.600000e+01 : f32
    %158 = vector.broadcast %cst_57 : f32 to vector<16x128xf32>
    %159 = arith.mulf %158, %155 : vector<16x128xf32>
    %160 = arith.addf %157, %159 : vector<16x128xf32>
    %161 = vector.extract_strided_slice %160 {offsets = [0, 32], sizes = [16, 1], strides = [1, 1]} : vector<16x128xf32> to vector<16x1xf32>
    %cst_58 = arith.constant 0.000000e+00 : f32
    %162 = vector.shape_cast %2 : vector<1x128xi1> to vector<1x128xi1>
    %163 = vector.broadcast %162 : vector<1x128xi1> to vector<16x128xi1>
    %164 = vector.broadcast %cst_58 : f32 to vector<16x128xf32>
    %165 = arith.select %163, %160, %164 : vector<16x128xi1>, vector<16x128xf32>
    %166 = tpu.reciprocal %161 {approx = true} : vector<16x1xf32> -> vector<16x1xf32>
    %167 = arith.mulf %161, %166 : vector<16x1xf32>
    %cst_59 = arith.constant 2.000000e+00 : f32
    %168 = vector.broadcast %cst_59 : f32 to vector<16x1xf32>
    %169 = arith.subf %168, %167 : vector<16x1xf32>
    %170 = arith.mulf %166, %169 : vector<16x1xf32>
    %171 = vector.broadcast %170 : vector<16x1xf32> to vector<16x128xf32>
    %172 = arith.mulf %165, %171 : vector<16x128xf32>
    %173 = arith.addf %172, %125 : vector<16x128xf32>
    %cst_60 = arith.constant 5.000000e-01 : f32
    %174 = vector.broadcast %cst_60 : f32 to vector<16x128xf32>
    %175 = arith.mulf %173, %174 : vector<16x128xf32>
    %c2 = arith.constant 2 : index
    %c0_61 = arith.constant 0 : index
    %c0_62 = arith.constant 0 : index
    %176 = vector.load %arg4[%c2, %c0_61, %c0_62] : memref<3x1x128xf32, #tpu.memory_space<vmem>>, vector<1x1x128xf32>
    %177 = vector.shape_cast %176 : vector<1x1x128xf32> to vector<1x128xf32>
    %c2_63 = arith.constant 2 : index
    %c0_64 = arith.constant 0 : index
    %c0_65 = arith.constant 0 : index
    %178 = vector.load %arg5[%c2_63, %c0_64, %c0_65] : memref<3x1x128xf32, #tpu.memory_space<vmem>>, vector<1x1x128xf32>
    %179 = vector.shape_cast %178 : vector<1x1x128xf32> to vector<1x128xf32>
    %cst_66 = arith.constant dense<0.000000e+00> : vector<16xf32>
    %180 = vector.multi_reduction <add>, %175, %cst_66 [1] : vector<16x128xf32> to vector<16xf32>
    %181 = vector.shape_cast %180 : vector<16xf32> to vector<16x1xf32>
    %cst_67 = arith.constant 3.125000e-02 : f32
    %182 = vector.broadcast %cst_67 : f32 to vector<16x1xf32>
    %183 = arith.mulf %181, %182 : vector<16x1xf32>
    %184 = vector.broadcast %183 : vector<16x1xf32> to vector<16x128xf32>
    %185 = arith.subf %175, %184 : vector<16x128xf32>
    %cst_68 = arith.constant 0.000000e+00 : f32
    %186 = vector.shape_cast %2 : vector<1x128xi1> to vector<1x128xi1>
    %187 = vector.broadcast %186 : vector<1x128xi1> to vector<16x128xi1>
    %188 = vector.broadcast %cst_68 : f32 to vector<16x128xf32>
    %189 = arith.select %187, %185, %188 : vector<16x128xi1>, vector<16x128xf32>
    %190 = arith.mulf %189, %189 : vector<16x128xf32>
    %cst_69 = arith.constant dense<0.000000e+00> : vector<16xf32>
    %191 = vector.multi_reduction <add>, %190, %cst_69 [1] : vector<16x128xf32> to vector<16xf32>
    %192 = vector.shape_cast %191 : vector<16xf32> to vector<16x1xf32>
    %cst_70 = arith.constant 3.125000e-02 : f32
    %193 = vector.broadcast %cst_70 : f32 to vector<16x1xf32>
    %194 = arith.mulf %192, %193 : vector<16x1xf32>
    %cst_71 = arith.constant 9.99999974E-6 : f32
    %195 = vector.broadcast %cst_71 : f32 to vector<16x1xf32>
    %196 = arith.addf %194, %195 : vector<16x1xf32>
    %197 = math.rsqrt %196 : vector<16x1xf32>
    %198 = vector.broadcast %197 : vector<16x1xf32> to vector<16x128xf32>
    %199 = arith.mulf %189, %198 : vector<16x128xf32>
    %200 = vector.broadcast %177 : vector<1x128xf32> to vector<16x128xf32>
    %201 = arith.mulf %199, %200 : vector<16x128xf32>
    %202 = vector.broadcast %179 : vector<1x128xf32> to vector<16x128xf32>
    %203 = arith.addf %201, %202 : vector<16x128xf32>
    %cst_72 = arith.constant 0.000000e+00 : f32
    %204 = vector.broadcast %cst_72 : f32 to vector<16x128xf32>
    %205 = arith.maximumf %203, %204 : vector<16x128xf32>
    %c0_73 = arith.constant 0 : index
    %c0_74 = arith.constant 0 : index
    %206 = vector.load %arg6[%c0_73, %c0_74] : memref<16x128xf32, #tpu.memory_space<vmem>>, vector<16x128xf32>
    tpu.vector_store %arg6[%c0_73, %c0_74], %205 {strides = array<i32>} : memref<16x128xf32, #tpu.memory_space<vmem>>, vector<16x128xf32>,
    return
  }
}

</mosaic_0001>

<bundles_post_ra>
// kernel: _forward_fused.1
= control target key start
LH: loop header
LB: loop body
LE: loop exit
PB: predicated region body
PF: predicated region fallthrough
CT: control target
= control target key end

     0   :  { %11 = vsyncpa [#allocation3], 0  ;;  %s2446_s0 = inlined_call_operand.vmem [shape: f32[16,128], index: 0, kind: input, shape index: {}]   ;;  %s2447_s1 = inlined_call_operand.hbm [shape: f32[128,128], index: 1, kind: input, shape index: {}]   ;;  %s2448_s2 = inlined_call_operand.vmem [shape: f32[1,128], index: 2, kind: input, shape index: {}]   ;;  %s2449_s3 = inlined_call_operand.hbm [shape: f32[2,128,384], index: 3, kind: input, shape index: {}]   ;;  %s2450_s4 = inlined_call_operand.vmem [shape: f32[3,1,128], index: 4, kind: input, shape index: {}]   ;;  %s2451_s5 = inlined_call_operand.vmem [shape: f32[3,1,128], index: 5, kind: input, shape index: {}]   ;;  %s2452_s6 = inlined_call_operand.hbm [shape: f32[16,128], index: 6, kind: output, shape index: {}]  }
   0x1   :  { %12 = vsyncpa [#allocation6], 0 }
   0x2   :  { %13 = vsyncpa [#allocation4], 0  ;;  %s2187_s21 = smov [#allocation2]   ;;  %s2115_s25 = scalar_lea.hbm %s2447_s1, 2048 }
   0x3   :  { %s21_s22 = sshll.u32 %s2187_s21, 4  ;;  %p2116_p0 = scmp.ne.s32.totalorder %s2447_s1, %s2115_s25  ;;  %s22_s22 = int_to_ptr.vmem [resolvable:$true] %s21_s22 }
   0x4   :  { %p2119_p1 = scmp.lt.u32.totalorder %s2115_s25, %s2447_s1 }
   0x6   :  { %p2121_p2 = pnand %p2119_p1, %p2116_p0 }
   0x8   :  { %2124 = shalt.err (!%p2121_p2)
}
   0x9   :  { %s2125_s30 = scalar_lea.vmem %s22_s22, 2048  ;;  %p2130_p4 = scmp.lt.s32.totalorder %s22_s22, %s22_s22 }
   0xa   :  { %p2126_p3 = scmp.ne.s32.totalorder %s22_s22, %s2125_s30  ;;  %p2131_p5 = scmp.lt.s32.totalorder %s2125_s30, %s2125_s30 }
   0xc   :  { %p2132_p6 = por %p2131_p5, %p2130_p4 }
   0xe   :  { %p2133_p7 = pnand %p2132_p6, %p2126_p3 }
  0x10   :  { %2136 = shalt.err (!%p2133_p7)
}
  0x11   :  { %s2188_s7 = smov 128   ;;  %s2189_s8 = smov 8  }
  0x12   :  { %27 = dma.hbm_to_vmem [thread:$0]  %s2447_s1, 2048, %s22_s22, [#allocation3], %s2188_s7, %s2188_s7, %s2189_s8  }
  0x13   :  { %s2190_s11 = smov [#allocation5]   ;;  %s2137_s15 = scalar_lea.hbm %s2449_s3, 12288 }
  0x14   :  { %s35_s12 = sshll.u32 %s2190_s11, 4  ;;  %p2138_p8 = scmp.ne.s32.totalorder %s2449_s3, %s2137_s15  ;;  %s36_s12 = int_to_ptr.vmem [resolvable:$true] %s35_s12 }
  0x15   :  { %p2141_p9 = scmp.lt.u32.totalorder %s2137_s15, %s2449_s3 }
  0x17   :  { %p2143_p10 = pnand %p2141_p9, %p2138_p8 }
  0x19   :  { %2146 = shalt.err (!%p2143_p10)
}
  0x1a   :  { %s2147_s20 = scalar_lea.vmem %s36_s12, 12288  ;;  %p2152_p12 = scmp.lt.s32.totalorder %s36_s12, %s36_s12 }
  0x1b   :  { %p2148_p11 = scmp.ne.s32.totalorder %s36_s12, %s2147_s20  ;;  %p2153_p13 = scmp.lt.s32.totalorder %s2147_s20, %s2147_s20 }
  0x1d   :  { %p2154_p0 = por %p2153_p13, %p2152_p12 }
  0x1f   :  { %p2155_p1 = pnand %p2154_p0, %p2148_p11 }
  0x21   :  { %2158 = shalt.err (!%p2155_p1)
}
  0x22   :  { %s2191_s1 = smov 384   ;;  %s2192_s21 = smov 24  }
  0x23   :  { %41 = dma.hbm_to_vmem [thread:$0]  %s2449_s3, 12288, %s36_s12, [#allocation6], %s2191_s1, %s2191_s1, %s2192_s21  }
  0x24   :  { %2181 = dma.done.wait [#allocation3], 2048  }
  0x25   :  { %2182 = vsyncadd [#allocation3], 4294965248 }
  0x26   :  { %2183 = dma.done.wait [#allocation6], 12288  }
  0x27   :  { %2184 = vsyncadd [#allocation6], 4294955008  ;;  %v61_v0 = vld [vmem:[#allocation2] sm:$0xff]  ;;  %v62_v1 = vld [vmem:[#allocation2 + $0x8] sm:$0xff]  ;;  %v52_v49 = vlaneseq  ;;  %vm467_vm6 = vcmask 130048   ;;  %s2195_s17 = smov [#allocation7]  }
  0x28   :  { %v63_v2 = vld [vmem:[#allocation2 + $0x10] sm:$0xff]  ;;  %v1836_v3 = vpack.c.bf16 %v62_v1, %v61_v0  ;;  %v64_v4 = vld [vmem:[#allocation2 + $0x18] sm:$0xff]  ;;  %v65_v6 = vld [vmem:[#allocation2 + $0x20] sm:$0xff]  ;;  %s1422_s18 = sshll.u32 %s2195_s17, 4  ;;  %s1423_s18 = int_to_ptr.vmem [resolvable:$true] %s1422_s18 }
  0x29   :  { %v1840_v5 = vpack.c.bf16 %v64_v4, %v63_v2  ;;  %v66_v7 = vld [vmem:[#allocation2 + $0x28] sm:$0xff]  ;;  %v59_v9 = vld [vmem:[%s2446_s0] sm:$0xff]  ;;  %v67_v10 = vld [vmem:[#allocation2 + $0x30] sm:$0xff]  ;;  %v2267_v50 = vand.u32 127, %v52_v49  ;;  %s2159_s19 = scalar_lea.vmem %s1423_s18, 256  ;;  %p2164_p3 = scmp.lt.s32.totalorder %s1423_s18, %s1423_s18 }
  0x2a   :  { %1837 = vmatprep.subr.bf16.mxu0 %v1836_v3  ;;  %v1844_v8 = vpack.c.bf16 %v66_v7, %v65_v6  ;;  %v68_v11 = vld [vmem:[#allocation2 + $0x38] sm:$0xff]  ;;  %1637 = vmatprep.mubr.f32.mxu0 %v59_v9  ;;  %v69_v13 = vld [vmem:[#allocation2 + $0x40] sm:$0xff]  ;;  %v70_v14 = vld [vmem:[#allocation2 + $0x48] sm:$0xff]  ;;  %p2160_p2 = scmp.ne.s32.totalorder %s1423_s18, %s2159_s19  ;;  %p2165_p4 = scmp.lt.s32.totalorder %s2159_s19, %s2159_s19 }
  0x2b   :  { %1839 = vmatpush3.bf16.msra.mxu0 %v1836_v3  ;;  %v1848_v12 = vpack.c.bf16 %v68_v11, %v67_v10  ;;  %v1852_v15 = vpack.c.bf16 %v70_v14, %v69_v13  ;;  %v71_v16 = vld [vmem:[#allocation2 + $0x50] sm:$0xff]  ;;  %v72_v17 = vld [vmem:[#allocation2 + $0x58] sm:$0xff]  ;;  %v73_v19 = vld [vmem:[#allocation2 + $0x60] sm:$0xff]  ;;  %vm54_vm0 = vcmp.lt.s32.totalorder %v2267_v50, 32  ;;  %vm56_vm5 = vcmp.eq.s32.totalorder %v2267_v50, 32 }
  0x2c   :  { %1841 = vmatprep.subr.bf16.mxu0 %v1840_v5  ;;  %v1856_v18 = vpack.c.bf16 %v72_v17, %v71_v16  ;;  %v74_v20 = vld [vmem:[#allocation2 + $0x68] sm:$0xff]  ;;  %v75_v22 = vld [vmem:[#allocation2 + $0x70] sm:$0xff]  ;;  %v76_v23 = vld [vmem:[#allocation2 + $0x78] sm:$0xff]  ;;  %p2166_p5 = por %p2165_p4, %p2164_p3 }
  0x2d   :  { %v1860_v21 = vpack.c.bf16 %v74_v20, %v73_v19  ;;  %v1864_v24 = vpack.c.bf16 %v76_v23, %v75_v22  ;;  %v60_v25 = vld [vmem:[%s2446_s0 + $0x8] sm:$0xff]  ;;  %v1436_v26 = vld [vmem:[%s2448_s2] ss:$0 sm:$0xff]  ;;  %v208_v35 = vld [vmem:[#allocation5 + $0x18] sm:$0xff]  ;;  %v2193_v19 = vmov 0.0  }
  0x2e   :  { %v206_v31 = vld [vmem:[#allocation5 + $0x8] sm:$0xff]  ;;  %v209_v32 = vld [vmem:[#allocation5 + $0x20] sm:$0xff]  ;;  %v212_v36 = vld [vmem:[#allocation5 + $0x38] sm:$0xff]  ;;  %317 = vmatprep.mubr.f32.mxu1 %v2193_v19  ;;  %p2167_p6 = pnand %p2166_p5, %p2160_p2 }
  0x2f   :  { %1843 = vmatpush3.bf16.msra.mxu0 %v1840_v5  ;;  %v205_v33 = vld [vmem:[#allocation5] sm:$0xff]  ;;  %v1868_v34 = vpack.c.bf16 %v209_v32, %v206_v31  ;;  %v215_v37 = vld [vmem:[#allocation5 + $0x50] sm:$0xff]  ;;  %v214_v41 = vld [vmem:[#allocation5 + $0x48] sm:$0xff] }
  0x30   :  { %1845 = vmatprep.subr.bf16.mxu0 %v1844_v8  ;;  %v1870_v38 = vpack.c.bf16 %v208_v35, %v205_v33  ;;  %v1872_v39 = vpack.c.bf16 %v215_v37, %v212_v36  ;;  %v211_v40 = vld [vmem:[#allocation5 + $0x30] sm:$0xff]  ;;  %v218_v42 = vld [vmem:[#allocation5 + $0x68] sm:$0xff]  ;;  %v221_v43 = vld [vmem:[#allocation5 + $0x80] sm:$0xff] }
  0x31   :  { %1869 = vmatprep.subr.bf16.mxu1 %v1868_v34  ;;  %v1874_v44 = vpack.c.bf16 %v214_v41, %v211_v40  ;;  %v1876_v45 = vpack.c.bf16 %v221_v43, %v218_v42  ;;  %v217_v46 = vld [vmem:[#allocation5 + $0x60] sm:$0xff]  ;;  %v220_v47 = vld [vmem:[#allocation5 + $0x78] sm:$0xff]  ;;  %v227_v62 = vld [vmem:[#allocation5 + $0xb0] sm:$0xff] }
  0x32   :  { %1871 = vmatpush1.bf16.msra.mxu1 %v1870_v38  ;;  %v1878_v48 = vpack.c.bf16 %v220_v47, %v217_v46  ;;  %v224_v61 = vld [vmem:[#allocation5 + $0x98] sm:$0xff]  ;;  %v223_v0 = vld [vmem:[#allocation5 + $0x90] sm:$0xff]  ;;  %v226_v1 = vld [vmem:[#allocation5 + $0xa8] sm:$0xff] }
  0x33   :  { %1847 = vmatpush3.bf16.msra.mxu0 %v1844_v8  ;;  %1873 = vmatprep.subr.bf16.mxu1 %v1872_v39  ;;  %v1880_v63 = vpack.c.bf16 %v227_v62, %v224_v61  ;;  %v1882_v2 = vpack.c.bf16 %v226_v1, %v223_v0  ;;  %v230_v3 = vld [vmem:[#allocation5 + $0xc8] sm:$0xff]  ;;  %v233_v4 = vld [vmem:[#allocation5 + $0xe0] sm:$0xff]  ;;  %v232_v7 = vld [vmem:[#allocation5 + $0xd8] sm:$0xff] }
  0x34   :  { %1849 = vmatprep.subr.bf16.mxu0 %v1848_v12  ;;  %v1884_v5 = vpack.c.bf16 %v233_v4, %v230_v3  ;;  %v229_v6 = vld [vmem:[#allocation5 + $0xc0] sm:$0xff]  ;;  %v236_v9 = vld [vmem:[#allocation5 + $0xf8] sm:$0xff]  ;;  %v239_v10 = vld [vmem:[#allocation5 + $0x110] sm:$0xff] }
  0x35   :  { %v1886_v8 = vpack.c.bf16 %v232_v7, %v229_v6  ;;  %v1888_v11 = vpack.c.bf16 %v239_v10, %v236_v9  ;;  %v238_v13 = vld [vmem:[#allocation5 + $0x108] sm:$0xff]  ;;  %v245_v16 = vld [vmem:[#allocation5 + $0x140] sm:$0xff]  ;;  %v251_v22 = vld [vmem:[#allocation5 + $0x170] sm:$0xff]  ;;  %v2303_v7 = vsel %vm54_vm0, 1e-06, %v2193_v19 }
  0x36   :  { %1875 = vmatpush1.bf16.msra.mxu1 %v1874_v44  ;;  %v242_v14 = vld [vmem:[#allocation5 + $0x128] sm:$0xff]  ;;  %v241_v17 = vld [vmem:[#allocation5 + $0x120] sm:$0xff]  ;;  %v216_v44 = vld [vmem:[#allocation5 + $0x58] sm:$0xff] }
  0x37   :  { %1851 = vmatpush3.bf16.msra.mxu0 %v1848_v12  ;;  %1877 = vmatprep.subr.bf16.mxu1 %v1876_v45  ;;  %v235_v12 = vld [vmem:[#allocation5 + $0xf0] sm:$0xff]  ;;  %v1892_v20 = vpack.c.bf16 %v245_v16, %v242_v14  ;;  %v1437_v38 = vld [vmem:[%s2450_s4] ss:$0 sm:$0xff]  ;;  %v1478_v50 = vld [vmem:[%s2451_s5 + $0x2] ss:$0 sm:$0xff] }
  0x38   :  { %1853 = vmatprep.subr.bf16.mxu0 %v1852_v15  ;;  %v1438_v40 = vld [vmem:[%s2451_s5] ss:$0 sm:$0xff]  ;;  %v243_v1 = vld [vmem:[#allocation5 + $0x130] sm:$0xff] }
  0x39   :  { %v213_v43 = vld [vmem:[#allocation5 + $0x40] sm:$0xff] }
  0x3a   :  { %1879 = vmatpush1.bf16.msra.mxu1 %v1878_v48  ;;  %v1904_v48 = vpack.c.bf16 %v216_v44, %v213_v43  ;;  %v237_v62 = vld [vmem:[#allocation5 + $0x100] sm:$0xff] }
  0x3b   :  { %1855 = vmatpush3.bf16.msra.mxu0 %v1852_v15  ;;  %1881 = vmatprep.subr.bf16.mxu1 %v1880_v63  ;;  %v1890_v15 = vpack.c.bf16 %v238_v13, %v235_v12  ;;  %v240_v63 = vld [vmem:[#allocation5 + $0x118] sm:$0xff]  ;;  %v249_v4 = vld [vmem:[#allocation5 + $0x160] sm:$0xff] }
  0x3c   :  { %1857 = vmatprep.subr.bf16.mxu0 %v1856_v18  ;;  %v1920_v0 = vpack.c.bf16 %v240_v63, %v237_v62 }
  0x3e   :  { %1883 = vmatpush1.bf16.msra.mxu1 %v1882_v2  ;;  %v246_v2 = vld [vmem:[#allocation5 + $0x148] sm:$0xff] }
  0x3f   :  { %1859 = vmatpush3.bf16.msra.mxu0 %v1856_v18  ;;  %1885 = vmatprep.subr.bf16.mxu1 %v1884_v5  ;;  %v244_v18 = vld [vmem:[#allocation5 + $0x138] sm:$0xff]  ;;  %v1924_v3 = vpack.c.bf16 %v246_v2, %v243_v1 }
  0x40   :  { %1861 = vmatprep.subr.bf16.mxu0 %v1860_v21  ;;  %v1894_v23 = vpack.c.bf16 %v244_v18, %v241_v17  ;;  %v252_v5 = vld [vmem:[#allocation5 + $0x178] sm:$0xff] }
  0x41   :  { %v1928_v6 = vpack.c.bf16 %v252_v5, %v249_v4 }
  0x42   :  { %1887 = vmatpush1.bf16.msra.mxu1 %v1886_v8 }
  0x43   :  { %1863 = vmatpush3.bf16.msra.mxu0 %v1860_v21  ;;  %1889 = vmatprep.subr.bf16.mxu1 %v1888_v11  ;;  %v248_v21 = vld [vmem:[#allocation5 + $0x158] sm:$0xff] }
  0x44   :  { %1865 = vmatprep.subr.bf16.mxu0 %v1864_v24 }
  0x46   :  { %1891 = vmatpush1.bf16.msra.mxu1 %v1890_v15 }
  0x47   :  { %1867 = vmatpush3.bf16.msra.mxu0 %v1864_v24  ;;  %1893 = vmatprep.subr.bf16.mxu1 %v1892_v20  ;;  %v1896_v24 = vpack.c.bf16 %v251_v22, %v248_v21  ;;  %v2315_v21 = vsel %vm56_vm5, 1.0, %v2193_v19 }
  0x4a   :  { %1638 = vmatmul.mubr.f32.vlgmr.msra.gmra.mrb[0].mxu0 %v60_v25  ;;  %v247_v25 = vld [vmem:[#allocation5 + $0x150] sm:$0xff]  ;;  %1895 = vmatpush1.bf16.msra.mxu1 %v1894_v23 }
  0x4b   :  { %1897 = vmatprep.subr.bf16.mxu1 %v1896_v24 }
 0x11d   :  { %v1639_v27 = vpop.f32.mrb[0].mxu0 }
 0x11e   :  { %v150_v28 = vpop.f32.mrb[1].mxu0  ;;  %v156_v30 = vadd.f32 %v1639_v27, %v1436_v26  ;;  %v207_v27 = vld [vmem:[#allocation5 + $0x10] sm:$0xff] }
 0x11f   :  { %v151_v29 = vadd.f32 %v1436_v26, %v150_v28  ;;  %v250_v26 = vld [vmem:[#allocation5 + $0x168] sm:$0xff] }
 0x120   :  { %v210_v28 = vld [vmem:[#allocation5 + $0x28] sm:$0xff] }
 0x121   :  { %161 = vadd.xlane.f32.xlu0 %v151_v29 }
 0x125   :  { %163 = vadd.xlane.f32.xlu0 %v156_v30 }
 0x1ae   :  { %v162_v51 = vpop.xlane.xlu0 %161 }
 0x1af   :  { %v165_v52 = vmul.f32 0.03125, %v162_v51  ;;  %v219_v51 = vld [vmem:[#allocation5 + $0x70] sm:$0xff] }
 0x1b1   :  { %v167_v53 = vsub.f32 %v151_v29, %v165_v52  ;;  %v1898_v29 = vpack.c.bf16 %v250_v26, %v247_v25  ;;  %v222_v52 = vld [vmem:[#allocation5 + $0x88] sm:$0xff] }
 0x1b2   :  { %v164_v54 = vpop.xlane.xlu0 %163 }
 0x1b3   :  { %v166_v55 = vmul.f32 0.03125, %v164_v54  ;;  %v2272_v56 = vsel %vm54_vm0, %v167_v53, 0.0  ;;  %1899 = vmatpush1.bf16.msra.mxu1 %v1898_v29 }
 0x1b4   :  { %v173_v57 = vmul.f32 %v2272_v56, %v2272_v56 }
 0x1b5   :  { %v168_v58 = vsub.f32 %v156_v30, %v166_v55  ;;  %v1900_v30 = vpack.c.bf16 %v210_v28, %v207_v27  ;;  %v1908_v55 = vpack.c.bf16 %v222_v52, %v219_v51 }
 0x1b6   :  { %175 = vadd.xlane.f32.xlu1 %v173_v57  ;;  %v228_v57 = vld [vmem:[#allocation5 + $0xb8] sm:$0xff] }
 0x1b7   :  { %v2278_v59 = vsel %vm54_vm0, %v168_v58, 0.0  ;;  %1901 = vmatprep.subr.bf16.mxu1 %v1900_v30 }
 0x1b8   :  { %v174_v60 = vmul.f32 %v2278_v59, %v2278_v59 }
 0x1ba   :  { %177 = vadd.xlane.f32.xlu1 %v174_v60  ;;  %v234_v60 = vld [vmem:[#allocation5 + $0xe8] sm:$0xff] }
 0x243   :  { %v176_v31 = vpop.xlane.xlu1 %175 }
 0x244   :  { %v179_v32 = vmul.f32 0.03125, %v176_v31 }
 0x246   :  { %v181_v33 = vadd.f32 1e-05, %v179_v32 }
 0x247   :  { %v178_v34 = vpop.xlane.xlu1 %177 }
 0x248   :  { %2079 = vrsqrt.f32 %v181_v33  ;;  %v180_v35 = vmul.f32 0.03125, %v178_v34 }
 0x24a   :  { %v182_v36 = vadd.f32 1e-05, %v180_v35 }
 0x24c   :  { %2081 = vrsqrt.f32 %v182_v36 }
 0x252   :  { %v2080_v37 = vpop.eup %2079 }
 0x253   :  { %v185_v39 = vmul.f32 %v2080_v37, %v2272_v56  ;;  %v225_v56 = vld [vmem:[#allocation5 + $0xa0] sm:$0xff] }
 0x254   :  { %v1912_v58 = vpack.c.bf16 %v228_v57, %v225_v56 }
 0x255   :  { %v193_v41 = vmul.f32 %v1437_v38, %v185_v39 }
 0x256   :  { %v2082_v42 = vpop.eup %2081 }
 0x257   :  { %v201_v45 = vadd.f32 %v1438_v40, %v193_v41  ;;  %v186_v46 = vmul.f32 %v2082_v42, %v2278_v59  ;;  %v231_v59 = vld [vmem:[#allocation5 + $0xd0] sm:$0xff] }
 0x258   :  { %v1916_v61 = vpack.c.bf16 %v234_v60, %v231_v59 }
 0x259   :  { %v2291_v47 = vmax.f32 %v201_v45, 0.0  ;;  %v194_v49 = vmul.f32 %v1437_v38, %v186_v46 }
 0x25b   :  { %318 = vmatmul.mubr.f32.vlgmr.msra.gmra.mrb[0].mxu1 %v2291_v47  ;;  %v202_v53 = vadd.f32 %v1438_v40, %v194_v49 }
 0x25c   :  { %1903 = vmatpush3.bf16.msra.mxu1 %v1900_v30  ;;  %323 = vmatprep.mubr.f32.mxu1 %v2193_v19 }
 0x25d   :  { %1905 = vmatprep.subr.bf16.mxu1 %v1904_v48  ;;  %v2295_v54 = vmax.f32 %v202_v53, 0.0 }
 0x25f   :  { %324 = vmatmul.mubr.f32.gmra.mrb[2].mxu1 %v2295_v54 }
 0x260   :  { %1907 = vmatpush3.bf16.msra.mxu1 %v1904_v48  ;;  %1672 = vmatprep.mubr.f32.mxu1 %v2291_v47 }
 0x261   :  { %1909 = vmatprep.subr.bf16.mxu1 %v1908_v55 }
 0x264   :  { %1911 = vmatpush3.bf16.msra.mxu1 %v1908_v55 }
 0x265   :  { %1913 = vmatprep.subr.bf16.mxu1 %v1912_v58 }
 0x268   :  { %1915 = vmatpush3.bf16.msra.mxu1 %v1912_v58 }
 0x269   :  { %1917 = vmatprep.subr.bf16.mxu1 %v1916_v61 }
 0x26c   :  { %1919 = vmatpush3.bf16.msra.mxu1 %v1916_v61 }
 0x26d   :  { %1921 = vmatprep.subr.bf16.mxu1 %v1920_v0 }
 0x270   :  { %1923 = vmatpush3.bf16.msra.mxu1 %v1920_v0 }
 0x271   :  { %1925 = vmatprep.subr.bf16.mxu1 %v1924_v3 }
 0x274   :  { %1927 = vmatpush3.bf16.msra.mxu1 %v1924_v3 }
 0x275   :  { %1929 = vmatprep.subr.bf16.mxu1 %v1928_v6 }
 0x278   :  { %1931 = vmatpush3.bf16.msra.mxu1 %v1928_v6 }
 0x27b   :  { %1673 = vmatmul.mubr.f32.vlgmr.msra.gmra.mrb[4].mxu1 %v2295_v54 }
 0x32e   :  { %v319_v8 = vpop.f32.mrb[0].mxu1 }
 0x32f   :  { %v321_v9 = vpop.f32.mrb[1].mxu1  ;;  %vm405_vm2 = vcmp.eq.f32.partialorder %v319_v8, 0.0 }
 0x330   :  { %vm409_vm1 = vcmp.eq.f32.partialorder %v321_v9, 0.0  ;;  %v407_v16 = vsel %vm405_vm2, %v2303_v7, %v319_v8 }
 0x331   :  { %v411_v10 = vsel %vm409_vm1, %v2303_v7, %v321_v9  ;;  %v413_v17 = vmul.f32 %v407_v16, %v407_v16 }
 0x332   :  { %v325_v11 = vpop.f32.mrb[2].mxu1  ;;  %v423_v12 = vmul.f32 %v411_v10, %v411_v10 }
 0x333   :  { %v327_v13 = vpop.f32.mrb[3].mxu1  ;;  %vm406_vm4 = vcmp.eq.f32.partialorder %v325_v11, 0.0 }
 0x334   :  { %vm410_vm3 = vcmp.eq.f32.partialorder %v327_v13, 0.0  ;;  %425 = vadd.xlane.f32.xlu0 %v423_v12  ;;  %v2309_v18 = vsel %vm406_vm4, %v2303_v7, %v325_v11 }
 0x335   :  { %v412_v14 = vsel %vm410_vm3, %v2303_v7, %v327_v13  ;;  %v414_v20 = vmul.f32 %v2309_v18, %v2309_v18 }
 0x336   :  { %v424_v15 = vmul.f32 %v412_v14, %v412_v14 }
 0x338   :  { %427 = vadd.xlane.f32.xlu1 %v424_v15 }
 0x33c   :  { %415 = vadd.xlane.f32.xlu1 %v413_v17 }
 0x340   :  { %417 = vadd.xlane.f32.xlu1 %v414_v20 }
 0x34e   :  { %v1674_v22 = vpop.f32.mrb[4].mxu1 }
 0x34f   :  { %v2318_v23 = vadd.f32 %v1674_v22, %v2315_v21  ;;  %v396_v24 = vpop.f32.mrb[5].mxu1  ;;  %v2194_v22 = vmov 32  }
 0x350   :  { %v2321_v25 = vadd.f32 %v2315_v21, %v396_v24  ;;  %2077 = vset.pattern.permute.xlu1 %v2194_v22 }
 0x351   :  { %v662_v24 = vmul.f32 16.0, %v2318_v23 }
 0x352   :  { %v1932_v26 = vpack.c.bf16 %v2318_v23, %v2321_v25 }
 0x354   :  { %1933 = vmatprep.subr.bf16.mxu0 %v1932_v26 }
 0x355   :  { %1935 = vmatpush3.bf16.msra.mxu0 %v1932_v26 }
 0x3c1   :  { %v426_v27 = vpop.xlane.xlu0 %425 }
 0x3c2   :  { %2083 = vrsqrt.f32 %v426_v27  ;;  %v661_v27 = vmul.f32 16.0, %v2321_v25 }
 0x3c5   :  { %v428_v28 = vpop.xlane.xlu1 %427 }
 0x3c6   :  { %2085 = vrsqrt.f32 %v428_v28 }
 0x3c9   :  { %v416_v29 = vpop.xlane.xlu1 %415 }
 0x3ca   :  { %2087 = vrsqrt.f32 %v416_v29 }
 0x3cc   :  { %v2084_v30 = vpop.eup %2083 }
 0x3cd   :  { %v431_v31 = vmul.f32 %v2084_v30, %v411_v10  ;;  %v418_v10 = vpop.xlane.xlu1 %417 }
 0x3ce   :  { %2089 = vrsqrt.f32 %v418_v10 }
 0x3cf   :  { %435 = vxpose.xlu0.b32.start [1/2] (short) %v431_v31, 128 }
 0x3d0   :  { %v2086_v32 = vpop.eup %2085 }
 0x3d1   :  { %v432_v33 = vmul.f32 %v2086_v32, %v412_v14 }
 0x3d3   :  { %436 = vxpose.xlu0.b32.end [2/2] (short) %v432_v33, 128 }
 0x3d4   :  { %v2088_v34 = vpop.eup %2087 }
 0x3d5   :  { %v421_v35 = vmul.f32 %v2088_v34, %v407_v16 }
 0x3d7   :  { %1735 = vmatprep.mubr.f32.mxu1 %v421_v35 }
 0x3d8   :  { %v2090_v17 = vpop.eup %2089 }
 0x3d9   :  { %v422_v20 = vmul.f32 %v2090_v17, %v2309_v18 }
 0x3fc   :  { %2078 = vset.pattern.permute.xlu0 %v2194_v22  ;;  %v833_v22 = vld [vmem:[#allocation5 + $0x230] sm:$0xff] }
 0x44f   :  { %v451_v36 = vpop.trf.xlu0 }
 0x450   :  { %1679 = vmatprep.mubr.msk.f32.mxu0 %vm467_vm6, %v451_v36 }
 0x453   :  { %v452_v37 = vpop.trf.xlu0 }
 0x454   :  { %1680 = vmatmul.mubr.msk.f32.vlgmr.msra.gmra.mrb[2].mxu0 %vm467_vm6, %v452_v37 }
 0x457   :  { %v453_v38 = vpop.trf.xlu0 }
 0x458   :  { %1682 = vmatprep.mubr.msk.f32.mxu0 %vm467_vm6, %v453_v38 }
 0x45b   :  { %v454_v39 = vpop.trf.xlu0 }
 0x45c   :  { %1683 = vmatmul.mubr.msk.f32.gmra.mrb[4].mxu0 %vm467_vm6, %v454_v39 }
 0x45f   :  { %v455_v40 = vpop.trf.xlu0 }
 0x460   :  { %1685 = vmatprep.mubr.msk.f32.mxu0 %vm467_vm6, %v455_v40 }
 0x463   :  { %v456_v41 = vpop.trf.xlu0 }
 0x464   :  { %1686 = vmatmul.mubr.msk.f32.gmra.mrb[6].mxu0 %vm467_vm6, %v456_v41 }
 0x467   :  { %v457_v42 = vpop.trf.xlu0 }
 0x468   :  { %1688 = vmatprep.mubr.msk.f32.mxu0 %vm467_vm6, %v457_v42 }
 0x46b   :  { %v458_v43 = vpop.trf.xlu0 }
 0x46c   :  { %1689 = vmatmul.mubr.msk.f32.gmra.mrb[8].mxu0 %vm467_vm6, %v458_v43 }
 0x46f   :  { %v459_v44 = vpop.trf.xlu0 }
 0x470   :  { %1691 = vmatprep.mubr.msk.f32.mxu0 %vm467_vm6, %v459_v44 }
 0x473   :  { %v460_v45 = vpop.trf.xlu0 }
 0x474   :  { %1692 = vmatmul.mubr.msk.f32.gmra.mrb[10].mxu0 %vm467_vm6, %v460_v45 }
 0x477   :  { %v461_v46 = vpop.trf.xlu0 }
 0x478   :  { %1694 = vmatprep.mubr.msk.f32.mxu0 %vm467_vm6, %v461_v46  ;;  %v812_v46 = vld [vmem:[#allocation5 + $0x188] sm:$0xff] }
 0x47b   :  { %v462_v48 = vpop.trf.xlu0 }
 0x47c   :  { %1695 = vmatmul.mubr.msk.f32.gmra.mrb[12].mxu0 %vm467_vm6, %v462_v48  ;;  %v815_v48 = vld [vmem:[#allocation5 + $0x1a0] sm:$0xff] }
 0x47f   :  { %v463_v49 = vpop.trf.xlu0 }
 0x480   :  { %1697 = vmatprep.mubr.msk.f32.mxu0 %vm467_vm6, %v463_v49  ;;  %v811_v49 = vld [vmem:[#allocation5 + $0x180] sm:$0xff] }
 0x483   :  { %v464_v51 = vpop.trf.xlu0 }
 0x484   :  { %1698 = vmatmul.mubr.msk.f32.gmra.mrb[14].mxu0 %vm467_vm6, %v464_v51  ;;  %v1968_v51 = vpack.c.bf16 %v815_v48, %v812_v46  ;;  %v848_v48 = vld [vmem:[#allocation5 + $0x2a8] sm:$0xff] }
 0x486   :  { %1969 = vmatprep.subr.bf16.mxu0 %v1968_v51  ;;  %v843_v51 = vld [vmem:[#allocation5 + $0x280] sm:$0xff] }
 0x487   :  { %v465_v52 = vpop.trf.xlu0 }
 0x488   :  { %1700 = vmatprep.mubr.msk.f32.mxu0 %vm467_vm6, %v465_v52  ;;  %v814_v52 = vld [vmem:[#allocation5 + $0x198] sm:$0xff] }
 0x48b   :  { %v466_v53 = vpop.trf.xlu0 }
 0x48c   :  { %1701 = vmatmul.mubr.msk.f32.gmra.mrb[16].mxu0 %vm467_vm6, %v466_v53  ;;  %v818_v53 = vld [vmem:[#allocation5 + $0x1b8] sm:$0xff] }
 0x48d   :  { %923 = vmatprep.mubr.f32.mxu0 %v2193_v19 }
 0x527   :  { %v1681_v55 = vpop.f32.mrb[2].mxu0 }
 0x528   :  { %v582_v56 = vpop.f32.mrb[3].mxu0 }
 0x529   :  { %v1936_v57 = vpack.c.bf16 %v1681_v55, %v582_v56  ;;  %v821_v55 = vld [vmem:[#allocation5 + $0x1d0] sm:$0xff]  ;;  %v1970_v56 = vpack.c.bf16 %v814_v52, %v811_v49  ;;  %v851_v49 = vld [vmem:[#allocation5 + $0x2c0] sm:$0xff] }
 0x52a   :  { %v1992_v52 = vpack.c.bf16 %v851_v49, %v848_v48 }
 0x52b   :  { %1937 = vmatprep.subr.bf16.mxu1 %v1936_v57  ;;  %1971 = vmatpush1.bf16.msra.mxu0 %v1970_v56  ;;  %v850_v56 = vld [vmem:[#allocation5 + $0x2b8] sm:$0xff] }
 0x52c   :  { %1939 = vmatpush3.bf16.msra.mxu1 %v1936_v57  ;;  %v813_v57 = vld [vmem:[#allocation5 + $0x190] sm:$0xff] }
 0x52f   :  { %v1684_v58 = vpop.f32.mrb[4].mxu0 }
 0x530   :  { %v592_v59 = vpop.f32.mrb[5].mxu0 }
 0x531   :  { %v1940_v60 = vpack.c.bf16 %v1684_v58, %v592_v59  ;;  %v816_v58 = vld [vmem:[#allocation5 + $0x1a8] sm:$0xff]  ;;  %v817_v59 = vld [vmem:[#allocation5 + $0x1b0] sm:$0xff] }
 0x533   :  { %1941 = vmatprep.subr.bf16.mxu1 %v1940_v60 }
 0x534   :  { %1943 = vmatpush3.bf16.msra.mxu1 %v1940_v60  ;;  %v2000_v60 = vpack.c.bf16 %v816_v58, %v813_v57  ;;  %v854_v58 = vld [vmem:[#allocation5 + $0x2d8] sm:$0xff] }
 0x537   :  { %v1687_v61 = vpop.f32.mrb[6].mxu0 }
 0x538   :  { %v602_v62 = vpop.f32.mrb[7].mxu0 }
 0x539   :  { %v1944_v63 = vpack.c.bf16 %v1687_v61, %v602_v62  ;;  %v820_v61 = vld [vmem:[#allocation5 + $0x1c8] sm:$0xff] }
 0x53a   :  { %v824_v62 = vld [vmem:[#allocation5 + $0x1e8] sm:$0xff] }
 0x53b   :  { %1945 = vmatprep.subr.bf16.mxu1 %v1944_v63 }
 0x53c   :  { %1947 = vmatpush3.bf16.msra.mxu1 %v1944_v63  ;;  %v827_v63 = vld [vmem:[#allocation5 + $0x200] sm:$0xff] }
 0x53f   :  { %v1690_v0 = vpop.f32.mrb[8].mxu0 }
 0x540   :  { %v612_v1 = vpop.f32.mrb[9].mxu0 }
 0x541   :  { %v1948_v2 = vpack.c.bf16 %v1690_v0, %v612_v1  ;;  %v819_v0 = vld [vmem:[#allocation5 + $0x1c0] sm:$0xff]  ;;  %v822_v1 = vld [vmem:[#allocation5 + $0x1d8] sm:$0xff] }
 0x543   :  { %1949 = vmatprep.subr.bf16.mxu1 %v1948_v2 }
 0x544   :  { %1951 = vmatpush3.bf16.msra.mxu1 %v1948_v2  ;;  %v1976_v2 = vpack.c.bf16 %v827_v63, %v824_v62  ;;  %v852_v62 = vld [vmem:[#allocation5 + $0x2c8] sm:$0xff]  ;;  %v853_v63 = vld [vmem:[#allocation5 + $0x2d0] sm:$0xff] }
 0x547   :  { %v1693_v3 = vpop.f32.mrb[10].mxu0 }
 0x548   :  { %v622_v4 = vpop.f32.mrb[11].mxu0 }
 0x549   :  { %v1952_v5 = vpack.c.bf16 %v1693_v3, %v622_v4  ;;  %v2004_v3 = vpack.c.bf16 %v822_v1, %v819_v0 }
 0x54b   :  { %1953 = vmatprep.subr.bf16.mxu1 %v1952_v5 }
 0x54c   :  { %1955 = vmatpush3.bf16.msra.mxu1 %v1952_v5 }
 0x54f   :  { %v1696_v6 = vpop.f32.mrb[12].mxu0 }
 0x550   :  { %v632_v8 = vpop.f32.mrb[13].mxu0 }
 0x551   :  { %v1956_v9 = vpack.c.bf16 %v1696_v6, %v632_v8 }
 0x553   :  { %1957 = vmatprep.subr.bf16.mxu1 %v1956_v9 }
 0x554   :  { %1959 = vmatpush3.bf16.msra.mxu1 %v1956_v9 }
 0x557   :  { %v1699_v11 = vpop.f32.mrb[14].mxu0 }
 0x558   :  { %v642_v12 = vpop.f32.mrb[15].mxu0 }
 0x559   :  { %v1960_v13 = vpack.c.bf16 %v1699_v11, %v642_v12 }
 0x55b   :  { %1961 = vmatprep.subr.bf16.mxu1 %v1960_v13 }
 0x55c   :  { %1963 = vmatpush3.bf16.msra.mxu1 %v1960_v13 }
 0x55f   :  { %v1702_v14 = vpop.f32.mrb[16].mxu0 }
 0x560   :  { %v652_v15 = vpop.f32.mrb[17].mxu0 }
 0x561   :  { %v1964_v16 = vpack.c.bf16 %v1702_v14, %v652_v15  ;;  %v823_v15 = vld [vmem:[#allocation5 + $0x1e0] sm:$0xff] }
 0x563   :  { %1965 = vmatprep.subr.bf16.mxu1 %v1964_v16 }
 0x564   :  { %1967 = vmatpush3.bf16.msra.mxu1 %v1964_v16  ;;  %v826_v16 = vld [vmem:[#allocation5 + $0x1f8] sm:$0xff] }
 0x565   :  { %2001 = vmatprep.subr.bf16.mxu1 %v2000_v60  ;;  %v1978_v17 = vpack.c.bf16 %v826_v16, %v823_v15  ;;  %v1457_v15 = vld [vmem:[%s2450_s4 + $0x1] ss:$0 sm:$0xff] }
 0x567   :  { %1736 = vmatmul.mubr.f32.vlgmr.msra.gmra.mrb[6].mxu1 %v422_v20  ;;  %v830_v20 = vld [vmem:[#allocation5 + $0x218] sm:$0xff] }
 0x568   :  { %2003 = vmatpush3.bf16.msra.mxu1 %v2000_v60  ;;  %v849_v60 = vld [vmem:[#allocation5 + $0x2b0] sm:$0xff] }
 0x569   :  { %2005 = vmatprep.subr.bf16.mxu1 %v2004_v3  ;;  %v2024_v0 = vpack.c.bf16 %v852_v62, %v849_v60 }
 0x56c   :  { %2007 = vmatpush3.bf16.msra.mxu1 %v2004_v3  ;;  %v858_v3 = vld [vmem:[#allocation5 + $0x2f8] sm:$0xff] }
 0x63a   :  { %v1737_v26 = vpop.f32.mrb[6].mxu1 }
 0x63b   :  { %v735_v28 = vadd.f32 %v1737_v26, %v662_v24  ;;  %v729_v29 = vpop.f32.mrb[7].mxu1  ;;  %v825_v24 = vld [vmem:[#allocation5 + $0x1f0] sm:$0xff]  ;;  %v1980_v26 = vpack.c.bf16 %v833_v22, %v830_v20 }
 0x63c   :  { %v730_v30 = vadd.f32 %v729_v29, %v661_v27  ;;  %v828_v27 = vld [vmem:[#allocation5 + $0x208] sm:$0xff] }
 0x63d   :  { %2091 = vrcp.f32 %v735_v28  ;;  %v739_v40 = vsel %vm54_vm0, %v735_v28, 0.0  ;;  %v832_v29 = vld [vmem:[#allocation5 + $0x228] sm:$0xff] }
 0x63e   :  { %2093 = vrcp.f32 %v730_v30  ;;  %v738_v23 = vsel %vm54_vm0, %v730_v30, 0.0 }
 0x647   :  { %v2092_v31 = vpop.eup %2091 }
 0x648   :  { %v2094_v32 = vpop.eup %2093  ;;  %v743_v33 = vmul.f32 %v2092_v31, %v735_v28  ;;  %v829_v28 = vld [vmem:[#allocation5 + $0x210] sm:$0xff] }
 0x649   :  { %v742_v34 = vmul.f32 %v2094_v32, %v730_v30  ;;  %v2008_v30 = vpack.c.bf16 %v828_v27, %v825_v24 }
 0x64a   :  { %v745_v18 = vsub.f32 2.0, %v743_v33  ;;  %v839_v33 = vld [vmem:[#allocation5 + $0x260] sm:$0xff] }
 0x64b   :  { %v744_v35 = vsub.f32 2.0, %v742_v34  ;;  %2009 = vmatprep.subr.bf16.mxu1 %v2008_v30  ;;  %v831_v34 = vld [vmem:[#allocation5 + $0x220] sm:$0xff] }
 0x64c   :  { %v747_v37 = vmul.f32 %v2092_v31, %v745_v18  ;;  %v1982_v31 = vpack.c.bf16 %v832_v29, %v829_v28  ;;  %2011 = vmatpush3.bf16.msra.mxu1 %v2008_v30  ;;  %v834_v18 = vld [vmem:[#allocation5 + $0x238] sm:$0xff] }
 0x64d   :  { %v746_v36 = vmul.f32 %v2094_v32, %v744_v35  ;;  %v836_v32 = vld [vmem:[#allocation5 + $0x248] sm:$0xff] }
 0x64e   :  { %v1984_v35 = vpack.c.bf16 %v839_v33, %v836_v32 }
 0x64f   :  { %750 = vperm.xlu1 %2077, %v746_v36   ;;  %v835_v36 = vld [vmem:[#allocation5 + $0x240] sm:$0xff] }
 0x653   :  { %755 = vperm.xlu1 %2077, %v747_v37   ;;  %v838_v37 = vld [vmem:[#allocation5 + $0x258] sm:$0xff] }
 0x6ce   :  { %v751_v38 = vpop.permute.xlu1 %750 }
 0x6cf   :  { %v758_v25 = vmul.f32 %v751_v38, %v738_v23  ;;  %v2012_v38 = vpack.c.bf16 %v834_v18, %v831_v34  ;;  %v1986_v23 = vpack.c.bf16 %v838_v37, %v835_v36 }
 0x6d1   :  { %v760_v39 = vadd.f32 %v758_v25, %v2291_v47  ;;  %v1972_v47 = vpack.c.bf16 %v821_v55, %v818_v53  ;;  %2013 = vmatprep.subr.bf16.mxu1 %v2012_v38  ;;  %v842_v25 = vld [vmem:[#allocation5 + $0x278] sm:$0xff]  ;;  %v847_v55 = vld [vmem:[#allocation5 + $0x2a0] sm:$0xff] }
 0x6d2   :  { %v756_v41 = vpop.permute.xlu1 %755  ;;  %2015 = vmatpush3.bf16.msra.mxu1 %v2012_v38  ;;  %v846_v53 = vld [vmem:[#allocation5 + $0x298] sm:$0xff]  ;;  %v1994_v57 = vpack.c.bf16 %v850_v56, %v847_v55 }
 0x6d3   :  { %v759_v42 = vmul.f32 %v756_v41, %v739_v40  ;;  %v762_v43 = vmul.f32 0.5, %v760_v39  ;;  %1973 = vmatprep.subr.bf16.mxu0 %v1972_v47  ;;  %v845_v39 = vld [vmem:[#allocation5 + $0x290] sm:$0xff]  ;;  %v2020_v47 = vpack.c.bf16 %v846_v53, %v843_v51 }
 0x6d4   :  { %v837_v40 = vld [vmem:[#allocation5 + $0x250] sm:$0xff]  ;;  %v1988_v41 = vpack.c.bf16 %v845_v39, %v842_v25 }
 0x6d5   :  { %768 = vadd.xlane.f32.xlu1 %v762_v43  ;;  %v761_v44 = vadd.f32 %v759_v42, %v2295_v54  ;;  %v1974_v54 = vpack.c.bf16 %v820_v61, %v817_v59  ;;  %v840_v42 = vld [vmem:[#allocation5 + $0x268] sm:$0xff]  ;;  %v857_v59 = vld [vmem:[#allocation5 + $0x2f0] sm:$0xff] }
 0x6d6   :  { %v1996_v61 = vpack.c.bf16 %v857_v59, %v854_v58 }
 0x6d7   :  { %v763_v45 = vmul.f32 0.5, %v761_v44  ;;  %1975 = vmatpush1.bf16.msra.mxu0 %v1974_v54  ;;  %v844_v44 = vld [vmem:[#allocation5 + $0x288] sm:$0xff] }
 0x6d8   :  { %1977 = vmatprep.subr.bf16.mxu0 %v1976_v2  ;;  %v856_v54 = vld [vmem:[#allocation5 + $0x2e8] sm:$0xff]  ;;  %v855_v2 = vld [vmem:[#allocation5 + $0x2e0] sm:$0xff] }
 0x6d9   :  { %770 = vadd.xlane.f32.xlu0 %v763_v45  ;;  %v1998_v1 = vpack.c.bf16 %v856_v54, %v853_v63 }
 0x6db   :  { %1979 = vmatpush1.bf16.msra.mxu0 %v1978_v17  ;;  %v1458_v17 = vld [vmem:[%s2451_s5 + $0x1] ss:$0 sm:$0xff] }
 0x6dc   :  { %1981 = vmatprep.subr.bf16.mxu0 %v1980_v26 }
 0x6df   :  { %1983 = vmatpush1.bf16.msra.mxu0 %v1982_v31 }
 0x6e0   :  { %1985 = vmatprep.subr.bf16.mxu0 %v1984_v35 }
 0x6e3   :  { %1987 = vmatpush1.bf16.msra.mxu0 %v1986_v23 }
 0x6e4   :  { %1989 = vmatprep.subr.bf16.mxu0 %v1988_v41 }
 0x762   :  { %v769_v4 = vpop.xlane.xlu1 %768 }
 0x763   :  { %v772_v5 = vmul.f32 0.03125, %v769_v4  ;;  %v2028_v4 = vpack.c.bf16 %v858_v3, %v855_v2 }
 0x765   :  { %v774_v6 = vsub.f32 %v762_v43, %v772_v5  ;;  %v841_v43 = vld [vmem:[#allocation5 + $0x270] sm:$0xff] }
 0x766   :  { %v771_v8 = vpop.xlane.xlu0 %770  ;;  %v1990_v46 = vpack.c.bf16 %v844_v44, %v841_v43 }
 0x767   :  { %v773_v9 = vmul.f32 0.03125, %v771_v8  ;;  %v2353_v10 = vsel %vm54_vm0, %v774_v6, 0.0 }
 0x768   :  { %v778_v11 = vmul.f32 %v2353_v10, %v2353_v10  ;;  %1991 = vmatpush1.bf16.msra.mxu0 %v1990_v46 }
 0x769   :  { %v775_v12 = vsub.f32 %v763_v45, %v773_v9  ;;  %v2016_v45 = vpack.c.bf16 %v840_v42, %v837_v40  ;;  %1993 = vmatprep.subr.bf16.mxu0 %v1992_v52 }
 0x76a   :  { %780 = vadd.xlane.f32.xlu1 %v778_v11 }
 0x76b   :  { %v2359_v13 = vsel %vm54_vm0, %v775_v12, 0.0  ;;  %2017 = vmatprep.subr.bf16.mxu1 %v2016_v45 }
 0x76c   :  { %v779_v14 = vmul.f32 %v2359_v13, %v2359_v13  ;;  %2019 = vmatpush3.bf16.msra.mxu1 %v2016_v45  ;;  %1995 = vmatpush1.bf16.msra.mxu0 %v1994_v57 }
 0x76d   :  { %2021 = vmatprep.subr.bf16.mxu1 %v2020_v47  ;;  %1997 = vmatprep.subr.bf16.mxu0 %v1996_v61 }
 0x76e   :  { %782 = vadd.xlane.f32.xlu1 %v779_v14 }
 0x770   :  { %2023 = vmatpush3.bf16.msra.mxu1 %v2020_v47  ;;  %1999 = vmatpush1.bf16.msra.mxu0 %v1998_v1 }
 0x771   :  { %2025 = vmatprep.subr.bf16.mxu1 %v2024_v0 }
 0x774   :  { %2027 = vmatpush3.bf16.msra.mxu1 %v2024_v0 }
 0x775   :  { %2029 = vmatprep.subr.bf16.mxu1 %v2028_v4 }
 0x778   :  { %2031 = vmatpush3.bf16.msra.mxu1 %v2028_v4 }
 0x7f7   :  { %v781_v5 = vpop.xlane.xlu1 %780 }
 0x7f8   :  { %v784_v6 = vmul.f32 0.03125, %v781_v5 }
 0x7fa   :  { %v786_v8 = vadd.f32 1e-05, %v784_v6 }
 0x7fb   :  { %v783_v9 = vpop.xlane.xlu1 %782 }
 0x7fc   :  { %2095 = vrsqrt.f32 %v786_v8  ;;  %v785_v11 = vmul.f32 0.03125, %v783_v9 }
 0x7fe   :  { %v787_v12 = vadd.f32 1e-05, %v785_v11 }
 0x800   :  { %2097 = vrsqrt.f32 %v787_v12 }
 0x806   :  { %v2096_v14 = vpop.eup %2095 }
 0x807   :  { %v790_v16 = vmul.f32 %v2096_v14, %v2353_v10 }
 0x809   :  { %v798_v20 = vmul.f32 %v1457_v15, %v790_v16 }
 0x80a   :  { %v2098_v22 = vpop.eup %2097 }
 0x80b   :  { %v806_v24 = vadd.f32 %v1458_v17, %v798_v20  ;;  %v791_v26 = vmul.f32 %v2098_v22, %v2359_v13 }
 0x80d   :  { %v2371_v27 = vmax.f32 %v806_v24, 0.0  ;;  %v799_v28 = vmul.f32 %v1457_v15, %v791_v26 }
 0x80f   :  { %924 = vmatmul.mubr.f32.vlgmr.msra.gmra.mrb[18].mxu0 %v2371_v27  ;;  %1770 = vmatprep.mubr.f32.mxu1 %v2371_v27  ;;  %v807_v29 = vadd.f32 %v1458_v17, %v799_v28 }
 0x810   :  { %929 = vmatprep.mubr.f32.mxu0 %v2193_v19 }
 0x811   :  { %v2376_v10 = vmax.f32 %v807_v29, 0.0 }
 0x813   :  { %930 = vmatmul.mubr.f32.gmra.mrb[20].mxu0 %v2376_v10  ;;  %1771 = vmatmul.mubr.f32.vlgmr.msra.gmra.mrb[8].mxu1 %v2376_v10 }
 0x8e2   :  { %v925_v30 = vpop.f32.mrb[18].mxu0 }
 0x8e3   :  { %v927_v31 = vpop.f32.mrb[19].mxu0  ;;  %vm1011_vm10 = vcmp.eq.f32.partialorder %v925_v30, 0.0 }
 0x8e4   :  { %vm1015_vm7 = vcmp.eq.f32.partialorder %v927_v31, 0.0  ;;  %v1013_v45 = vsel %vm1011_vm10, %v2303_v7, %v925_v30 }
 0x8e5   :  { %v1017_v13 = vsel %vm1015_vm7, %v2303_v7, %v927_v31  ;;  %v1019_v46 = vmul.f32 %v1013_v45, %v1013_v45 }
 0x8e6   :  { %v931_v32 = vpop.f32.mrb[20].mxu0  ;;  %v1772_v33 = vpop.f32.mrb[8].mxu1  ;;  %v1029_v34 = vmul.f32 %v1017_v13, %v1017_v13 }
 0x8e7   :  { %vm1012_vm8 = vcmp.eq.f32.partialorder %v931_v32, 0.0  ;;  %v2382_v35 = vadd.f32 %v1772_v33, %v2315_v21  ;;  %v933_v18 = vpop.f32.mrb[21].mxu0  ;;  %v1002_v19 = vpop.f32.mrb[9].mxu1 }
 0x8e8   :  { %v2385_v36 = vsel %vm1012_vm8, %v2303_v7, %v931_v32  ;;  %vm1016_vm9 = vcmp.eq.f32.partialorder %v933_v18, 0.0  ;;  %v2388_v37 = vadd.f32 %v2315_v21, %v1002_v19  ;;  %1031 = vadd.xlane.f32.xlu1 %v1029_v34 }
 0x8e9   :  { %v1018_v38 = vsel %vm1016_vm9, %v2303_v7, %v933_v18  ;;  %v1020_v23 = vmul.f32 %v2385_v36, %v2385_v36 }
 0x8ea   :  { %v2032_v25 = vpack.c.bf16 %v2382_v35, %v2388_v37  ;;  %v1030_v39 = vmul.f32 %v1018_v38, %v1018_v38 }
 0x8eb   :  { %1023 = vadd.xlane.f32.xlu0 %v1020_v23 }
 0x8ec   :  { %2033 = vmatprep.subr.bf16.mxu0 %v2032_v25  ;;  %1033 = vadd.xlane.f32.xlu1 %v1030_v39 }
 0x8ed   :  { %2035 = vmatpush3.bf16.msra.mxu0 %v2032_v25  ;;  %v1266_v25 = vmul.f32 16.0, %v2388_v37 }
 0x975   :  { %v1032_v40 = vpop.xlane.xlu1 %1031 }
 0x976   :  { %2099 = vrsqrt.f32 %v1032_v40 }
 0x978   :  { %v1024_v29 = vpop.xlane.xlu0 %1023 }
 0x979   :  { %v1034_v41 = vpop.xlane.xlu1 %1033 }
 0x97a   :  { %2101 = vrsqrt.f32 %v1034_v41 }
 0x980   :  { %v2100_v21 = vpop.eup %2099 }
 0x981   :  { %v1037_v42 = vmul.f32 %v2100_v21, %v1017_v13 }
 0x983   :  { %1041 = vxpose.xlu1.b32.start [1/2] (short) %v1037_v42, 128 }
 0x984   :  { %v2102_v43 = vpop.eup %2101 }
 0x985   :  { %v1038_v44 = vmul.f32 %v2102_v43, %v1018_v38  ;;  %v1267_v38 = vmul.f32 16.0, %v2382_v35 }
 0x987   :  { %1042 = vxpose.xlu1.b32.end [2/2] (short) %v1038_v44, 128 }
 0x9e6   :  { %1021 = vadd.xlane.f32.xlu1 %v1019_v46 }
 0xa03   :  { %v1057_v48 = vpop.trf.xlu1 }
 0xa04   :  { %1777 = vmatprep.mubr.msk.f32.mxu0 %vm467_vm6, %v1057_v48 }
 0xa07   :  { %v1058_v49 = vpop.trf.xlu1 }
 0xa08   :  { %1778 = vmatmul.mubr.msk.f32.vlgmr.msra.gmra.mrb[22].mxu0 %vm467_vm6, %v1058_v49 }
 0xa0b   :  { %v1059_v51 = vpop.trf.xlu1 }
 0xa0c   :  { %1780 = vmatprep.mubr.msk.f32.mxu0 %vm467_vm6, %v1059_v51 }
 0xa0f   :  { %v1060_v52 = vpop.trf.xlu1 }
 0xa10   :  { %1781 = vmatmul.mubr.msk.f32.gmra.mrb[24].mxu0 %vm467_vm6, %v1060_v52 }
 0xa13   :  { %v1061_v53 = vpop.trf.xlu1 }
 0xa14   :  { %1783 = vmatprep.mubr.msk.f32.mxu0 %vm467_vm6, %v1061_v53 }
 0xa17   :  { %v1062_v55 = vpop.trf.xlu1 }
 0xa18   :  { %1784 = vmatmul.mubr.msk.f32.gmra.mrb[26].mxu0 %vm467_vm6, %v1062_v55 }
 0xa1b   :  { %v1063_v7 = vpop.trf.xlu1 }
 0xa1c   :  { %1786 = vmatprep.mubr.msk.f32.mxu0 %vm467_vm6, %v1063_v7 }
 0xa1f   :  { %v1064_v56 = vpop.trf.xlu1 }
 0xa20   :  { %1787 = vmatmul.mubr.msk.f32.gmra.mrb[28].mxu0 %vm467_vm6, %v1064_v56 }
 0xa23   :  { %v1065_v47 = vpop.trf.xlu1 }
 0xa24   :  { %1789 = vmatprep.mubr.msk.f32.mxu0 %vm467_vm6, %v1065_v47 }
 0xa27   :  { %v1066_v57 = vpop.trf.xlu1 }
 0xa28   :  { %1790 = vmatmul.mubr.msk.f32.gmra.mrb[30].mxu0 %vm467_vm6, %v1066_v57 }
 0xa2b   :  { %v1067_v58 = vpop.trf.xlu1 }
 0xa2c   :  { %1792 = vmatprep.mubr.msk.f32.mxu0 %vm467_vm6, %v1067_v58 }
 0xa2f   :  { %v1068_v59 = vpop.trf.xlu1 }
 0xa30   :  { %1793 = vmatmul.mubr.msk.f32.gmra.mrb[32].mxu0 %vm467_vm6, %v1068_v59 }
 0xa33   :  { %v1069_v60 = vpop.trf.xlu1 }
 0xa34   :  { %1795 = vmatprep.mubr.msk.f32.mxu0 %vm467_vm6, %v1069_v60 }
 0xa37   :  { %v1070_v61 = vpop.trf.xlu1 }
 0xa38   :  { %1796 = vmatmul.mubr.msk.f32.gmra.mrb[34].mxu0 %vm467_vm6, %v1070_v61 }
 0xa3b   :  { %v1071_v62 = vpop.trf.xlu1 }
 0xa3c   :  { %1798 = vmatprep.mubr.msk.f32.mxu0 %vm467_vm6, %v1071_v62 }
 0xa3f   :  { %v1072_v63 = vpop.trf.xlu1 }
 0xa40   :  { %1799 = vmatmul.mubr.msk.f32.gmra.mrb[36].mxu0 %vm467_vm6, %v1072_v63 }
 0xa73   :  { %v1022_v54 = vpop.xlane.xlu1 %1021 }
 0xa74   :  { %2103 = vrsqrt.f32 %v1022_v54 }
 0xa75   :  { %2105 = vrsqrt.f32 %v1024_v29 }
 0xa7e   :  { %v2104_v0 = vpop.eup %2103 }
 0xa7f   :  { %v1027_v1 = vmul.f32 %v2104_v0, %v1013_v45  ;;  %v2106_v18 = vpop.eup %2105 }
 0xa80   :  { %v1028_v19 = vmul.f32 %v2106_v18, %v2385_v36 }
 0xa81   :  { %1833 = vmatprep.mubr.f32.mxu0 %v1027_v1 }
 0xadb   :  { %v1779_v2 = vpop.f32.mrb[22].mxu0 }
 0xadc   :  { %v1187_v3 = vpop.f32.mrb[23].mxu0 }
 0xadd   :  { %v2036_v4 = vpack.c.bf16 %v1779_v2, %v1187_v3 }
 0xadf   :  { %2037 = vmatprep.subr.bf16.mxu0 %v2036_v4 }
 0xae0   :  { %2039 = vmatpush3.bf16.msra.mxu0 %v2036_v4 }
 0xae3   :  { %v1782_v5 = vpop.f32.mrb[24].mxu0 }
 0xae4   :  { %v1197_v6 = vpop.f32.mrb[25].mxu0 }
 0xae5   :  { %v2040_v8 = vpack.c.bf16 %v1782_v5, %v1197_v6 }
 0xae7   :  { %2041 = vmatprep.subr.bf16.mxu0 %v2040_v8 }
 0xae8   :  { %2043 = vmatpush3.bf16.msra.mxu0 %v2040_v8  ;;  %v1477_v8 = vld [vmem:[%s2450_s4 + $0x2] ss:$0 sm:$0xff] }
 0xaeb   :  { %v1785_v9 = vpop.f32.mrb[26].mxu0 }
 0xaec   :  { %v1207_v11 = vpop.f32.mrb[27].mxu0 }
 0xaed   :  { %v2044_v12 = vpack.c.bf16 %v1785_v9, %v1207_v11 }
 0xaef   :  { %2045 = vmatprep.subr.bf16.mxu0 %v2044_v12 }
 0xaf0   :  { %2047 = vmatpush3.bf16.msra.mxu0 %v2044_v12 }
 0xaf3   :  { %v1788_v14 = vpop.f32.mrb[28].mxu0 }
 0xaf4   :  { %v1217_v15 = vpop.f32.mrb[29].mxu0 }
 0xaf5   :  { %v2048_v16 = vpack.c.bf16 %v1788_v14, %v1217_v15 }
 0xaf7   :  { %2049 = vmatprep.subr.bf16.mxu0 %v2048_v16 }
 0xaf8   :  { %2051 = vmatpush3.bf16.msra.mxu0 %v2048_v16 }
 0xafb   :  { %v1791_v17 = vpop.f32.mrb[30].mxu0 }
 0xafc   :  { %v1227_v20 = vpop.f32.mrb[31].mxu0 }
 0xafd   :  { %v2052_v22 = vpack.c.bf16 %v1791_v17, %v1227_v20 }
 0xaff   :  { %2053 = vmatprep.subr.bf16.mxu0 %v2052_v22 }
 0xb00   :  { %2055 = vmatpush3.bf16.msra.mxu0 %v2052_v22 }
 0xb03   :  { %v1794_v24 = vpop.f32.mrb[32].mxu0 }
 0xb04   :  { %v1237_v26 = vpop.f32.mrb[33].mxu0 }
 0xb05   :  { %v2056_v28 = vpack.c.bf16 %v1794_v24, %v1237_v26 }
 0xb07   :  { %2057 = vmatprep.subr.bf16.mxu0 %v2056_v28 }
 0xb08   :  { %2059 = vmatpush3.bf16.msra.mxu0 %v2056_v28 }
 0xb0b   :  { %v1797_v30 = vpop.f32.mrb[34].mxu0 }
 0xb0c   :  { %v1247_v31 = vpop.f32.mrb[35].mxu0 }
 0xb0d   :  { %v2060_v13 = vpack.c.bf16 %v1797_v30, %v1247_v31 }
 0xb0f   :  { %2061 = vmatprep.subr.bf16.mxu0 %v2060_v13 }
 0xb10   :  { %2063 = vmatpush3.bf16.msra.mxu0 %v2060_v13 }
 0xb13   :  { %v1800_v32 = vpop.f32.mrb[36].mxu0 }
 0xb14   :  { %v1257_v33 = vpop.f32.mrb[37].mxu0 }
 0xb15   :  { %v2064_v34 = vpack.c.bf16 %v1800_v32, %v1257_v33 }
 0xb17   :  { %2065 = vmatprep.subr.bf16.mxu0 %v2064_v34 }
 0xb18   :  { %2067 = vmatpush3.bf16.msra.mxu0 %v2064_v34 }
 0xb1b   :  { %1834 = vmatmul.mubr.f32.vlgmr.msra.gmra.mrb[38].mxu0 %v1028_v19 }
 0xbee   :  { %v1835_v23 = vpop.f32.mrb[38].mxu0 }
 0xbef   :  { %v1340_v39 = vadd.f32 %v1835_v23, %v1267_v38  ;;  %v1334_v40 = vpop.f32.mrb[39].mxu0 }
 0xbf0   :  { %v1335_v41 = vadd.f32 %v1334_v40, %v1266_v25 }
 0xbf1   :  { %2107 = vrcp.f32 %v1340_v39  ;;  %v1344_v52 = vsel %vm54_vm0, %v1340_v39, 0.0 }
 0xbf2   :  { %2109 = vrcp.f32 %v1335_v41  ;;  %v1343_v35 = vsel %vm54_vm0, %v1335_v41, 0.0 }
 0xbfb   :  { %v2108_v21 = vpop.eup %2107 }
 0xbfc   :  { %v2110_v42 = vpop.eup %2109  ;;  %v1348_v43 = vmul.f32 %v2108_v21, %v1340_v39 }
 0xbfd   :  { %v1347_v44 = vmul.f32 %v2110_v42, %v1335_v41 }
 0xbfe   :  { %v1350_v46 = vsub.f32 2.0, %v1348_v43 }
 0xbff   :  { %v1349_v45 = vsub.f32 2.0, %v1347_v44 }
 0xc00   :  { %v1352_v36 = vmul.f32 %v2108_v21, %v1350_v46 }
 0xc01   :  { %v1351_v48 = vmul.f32 %v2110_v42, %v1349_v45 }
 0xc03   :  { %1355 = vperm.xlu0 %2078, %v1351_v48  }
 0xc07   :  { %1360 = vperm.xlu0 %2078, %v1352_v36  }
 0xc82   :  { %v1356_v49 = vpop.permute.xlu0 %1355 }
 0xc83   :  { %v1363_v37 = vmul.f32 %v1356_v49, %v1343_v35 }
 0xc85   :  { %v1365_v51 = vadd.f32 %v1363_v37, %v2371_v27 }
 0xc86   :  { %v1361_v53 = vpop.permute.xlu0 %1360 }
 0xc87   :  { %v1364_v55 = vmul.f32 %v1361_v53, %v1344_v52  ;;  %v1367_v7 = vmul.f32 0.5, %v1365_v51 }
 0xc89   :  { %1373 = vadd.xlane.f32.xlu0 %v1367_v7  ;;  %v1366_v56 = vadd.f32 %v1364_v55, %v2376_v10 }
 0xc8b   :  { %v1368_v47 = vmul.f32 0.5, %v1366_v56 }
 0xc8d   :  { %1375 = vadd.xlane.f32.xlu1 %v1368_v47 }
 0xd16   :  { %v1374_v57 = vpop.xlane.xlu0 %1373 }
 0xd17   :  { %v1377_v58 = vmul.f32 0.03125, %v1374_v57 }
 0xd19   :  { %v1379_v59 = vsub.f32 %v1367_v7, %v1377_v58 }
 0xd1a   :  { %v1376_v60 = vpop.xlane.xlu1 %1375 }
 0xd1b   :  { %v1378_v61 = vmul.f32 0.03125, %v1376_v60  ;;  %v1381_v62 = vsel %vm54_vm0, %v1379_v59, 0.0 }
 0xd1c   :  { %v1383_v27 = vmul.f32 %v1381_v62, %v1381_v62 }
 0xd1d   :  { %v1380_v63 = vsub.f32 %v1368_v47, %v1378_v61 }
 0xd1e   :  { %1385 = vadd.xlane.f32.xlu0 %v1383_v27 }
 0xd1f   :  { %v1382_v54 = vsel %vm54_vm0, %v1380_v63, 0.0 }
 0xd20   :  { %v1384_v0 = vmul.f32 %v1382_v54, %v1382_v54 }
 0xd22   :  { %1387 = vadd.xlane.f32.xlu1 %v1384_v0 }
 0xdab   :  { %v1386_v1 = vpop.xlane.xlu0 %1385 }
 0xdac   :  { %v1389_v10 = vmul.f32 0.03125, %v1386_v1 }
 0xdae   :  { %v1391_v2 = vadd.f32 1e-05, %v1389_v10 }
 0xdaf   :  { %v1388_v3 = vpop.xlane.xlu1 %1387 }
 0xdb0   :  { %2111 = vrsqrt.f32 %v1391_v2  ;;  %v1390_v4 = vmul.f32 0.03125, %v1388_v3 }
 0xdb2   :  { %v1392_v5 = vadd.f32 1e-05, %v1390_v4 }
 0xdb4   :  { %2113 = vrsqrt.f32 %v1392_v5 }
 0xdba   :  { %v2112_v6 = vpop.eup %2111 }
 0xdbb   :  { %v1395_v9 = vmul.f32 %v2112_v6, %v1381_v62 }
 0xdbd   :  { %v1403_v11 = vmul.f32 %v1477_v8, %v1395_v9 }
 0xdbe   :  { %v2114_v12 = vpop.eup %2113 }
 0xdbf   :  { %v1396_v14 = vmul.f32 %v2114_v12, %v1382_v54  ;;  %v1411_v15 = vadd.f32 %v1478_v50, %v1403_v11 }
 0xdc1   :  { %v1404_v16 = vmul.f32 %v1477_v8, %v1396_v14  ;;  %v1413_v17 = vmax.f32 %v1411_v15, 0.0 }
 0xdc3   :  { %v1412_v20 = vadd.f32 %v1478_v50, %v1404_v16  ;;  %1415 = vst [vmem:[#allocation7] sm:$0xff] %v1413_v17 }
 0xdc5   :  { %v1414_v22 = vmax.f32 %v1412_v20, 0.0 }
 0xdc7   :  { %1416 = vst [vmem:[#allocation7 + $0x8] sm:$0xff] %v1414_v22 }
 0xdc8   :  { %2170 = shalt.err (!%p2167_p6)
}
 0xdc9   :  { %s2171_s20 = scalar_lea.hbm %s2452_s6, 256 }
 0xdca   :  { %p2172_p7 = scmp.ne.s32.totalorder %s2452_s6, %s2171_s20  ;;  %p2175_p8 = scmp.lt.u32.totalorder %s2171_s20, %s2452_s6 }
 0xdcc   :  { %p2177_p9 = pnand %p2175_p8, %p2172_p7 }
 0xdce   :  { %2180 = shalt.err (!%p2177_p9)
}
 0xdcf   :  { %1428 = dma.vmem_to_hbm [thread:$0]  %s1423_s18, 256, %s2452_s6, [#allocation4], %s2188_s7, %s2188_s7, %s2189_s8  }
 0xdd0   :  { %2185 = dma.done.wait [#allocation4], 256  }
 0xdd1   :  { %2186 = vsyncadd [#allocation4], 4294967040 }
 0xdd2   :  { %1432 = vsyncpa [#allocation3], 1 }
 0xdd3   :  { %1433 = vsyncpa [#allocation6], 1 }
 0xdd4   :  { %1434 = vsyncpa [#allocation4], 1 }

</bundles_post_ra>
